<compile_context>
chip_gen: v5e
topology: v5e:2x2
jax: 0.10.0
libtpu: 0.0.40
codegen_flags: <defaults>
</compile_context>

<pallas_src>
import jax
import jax.numpy as jnp
from jax import lax
from jax.experimental import pallas as pl
from jax.experimental.pallas import tpu as pltpu


# Weight-slab indices (each weight zero-padded to (P, P) and stacked).
WL1P, WR1P, WL1R, WR1R = 0, 1, 2, 3
WL2P, WR2P, WL3P, WR3P = 4, 5, 6, 7
WL2R, WR2R, WL3R, WR3R = 8, 9, 10, 11
WDEC_P, WDEC_R, WDEC2 = 12, 13, 14
NUM_W = 15

# Bias-slab rows (each bias zero-padded to P lanes).
B1P, B1R, B2P, B3P, B2R, B3R, BDEC, BDEC2 = range(8)

# Output-slab rows.
O_RECON_P, O_RECON_R, O_RECON_U = 0, 1, 2
O_MU_P, O_MU_R, O_LV_P, O_LV_R, O_Z = 3, 4, 5, 6, 7
OUT_LANES = 128


# ----------------------------------------------------------------------------
# Pallas kernel: fused GraphVAE forward
# ----------------------------------------------------------------------------
def _graph_vae_kernel(x_ref, a_ref, eps_ref, w_ref, b_ref, out_ref):
    f32, bf16 = jnp.float32, jnp.bfloat16
    N = a_ref.shape[1]          # num nodes
    P = x_ref.shape[2]          # padded feature width (= hidden_dim)

    def mm(a, b):
        return jnp.dot(a, b, preferred_element_type=f32)

    def bias(k):
        return b_ref[k:k + 1, :]        # (1, P), lane offset 0 (no shifts)

    def encode_branch(x_bf, a_bf, kl1, kr1, kb1, klm, krm, kbm, kll, krl, kbl):
        # SAGEConv1: mean aggregation (bf16 MXU, f32 acc), then W_l / W_r.
        agg1 = mm(a_bf, x_bf).astype(bf16)
        h = jnp.maximum(
            mm(agg1, w_ref[kl1]) + mm(x_bf, w_ref[kr1]) + bias(kb1), 0.0)
        h_bf = h.astype(bf16)
        # SAGEConv2 (mu) / SAGEConv3 (logvar) share the aggregated hidden.
        agg2 = mm(a_bf, h_bf).astype(bf16)
        mu = mm(agg2, w_ref[klm]) + mm(h_bf, w_ref[krm]) + bias(kbm)
        lv = mm(agg2, w_ref[kll]) + mm(h_bf, w_ref[krl]) + bias(kbl)
        return mu, lv

    mu_p, lv_p = encode_branch(x_ref[0], a_ref[0],
                               WL1P, WR1P, B1P, WL2P, WR2P, B2P,
                               WL3P, WR3P, B3P)
    mu_r, lv_r = encode_branch(x_ref[1], a_ref[1],
                               WL1R, WR1R, B1R, WL2R, WR2R, B2R,
                               WL3R, WR3R, B3R)

    # reparameterize: z = mu + eps * exp(0.5 * logvar)   (all f32 vector math;
    # eps padded lanes are zero, so padded lanes of z stay exactly zero).
    z_p = mu_p + eps_ref[0] * jnp.exp(0.5 * lv_p)
    z_r = mu_r + eps_ref[1] * jnp.exp(0.5 * lv_r)

    # concat_z: fc_decode weight split into two halves -> no lane concat.
    zd = (mm(z_p.astype(bf16), w_ref[WDEC_P]) +
          mm(z_r.astype(bf16), w_ref[WDEC_R]) + bias(BDEC))
    z = mm(zd.astype(bf16), w_ref[WDEC2]) + bias(BDEC2)

    # decode: row-normalized inner products (cosine gram, f32).
    def cosine_gram(v):
        inv = lax.rsqrt(jnp.sum(v * v, axis=1, keepdims=True) + 1e-16)
        vn = v * inv
        # contract axis 1 of both operands: no explicit transpose.
        return lax.dot_general(vn, vn, (((1,), (1,)), ((), ())),
                               preferred_element_type=f32)

    # Lane-aligned output slab: every piece stored at lane offset 0.
    out_ref[O_RECON_P, :, 0:N] = cosine_gram(z_p)
    out_ref[O_RECON_R, :, 0:N] = cosine_gram(z_r)
    out_ref[O_RECON_U, :, 0:N] = cosine_gram(z)
    out_ref[O_MU_P, :, 0:P] = mu_p
    out_ref[O_MU_R, :, 0:P] = mu_r
    out_ref[O_LV_P, :, 0:P] = lv_p
    out_ref[O_LV_R, :, 0:P] = lv_r
    out_ref[O_Z, :, 0:P] = z


# ----------------------------------------------------------------------------
# Wrapper
# ----------------------------------------------------------------------------
def graph_vae_forward(x_slab, a_slab, eps_slab, w_slab, b_slab, *, latent_dim):
    _, N, P = x_slab.shape
    L = latent_dim
    Lh = L // 2

    def full_spec(arr):
        zeros = (0,) * arr.ndim
        return pl.BlockSpec(arr.shape, lambda z=zeros: z)

    operands = (x_slab, a_slab, eps_slab, w_slab, b_slab)
    out = pl.pallas_call(
        _graph_vae_kernel,
        grid=(),
        in_specs=[full_spec(a) for a in operands],
        out_specs=pl.BlockSpec((8, N, OUT_LANES), lambda: (0, 0, 0)),
        out_shape=jax.ShapeDtypeStruct((8, N, OUT_LANES), jnp.float32),
        compiler_params=pltpu.CompilerParams(vmem_limit_bytes=8 << 20),
    )(*operands)

    recon_x_p = out[O_RECON_P, :, :N]
    recon_x_r = out[O_RECON_R, :, :N]
    recon_u = out[O_RECON_U, :, :N]
    mu_p = out[O_MU_P, :, :L]
    mu_r = out[O_MU_R, :, :L]
    logvar_p = out[O_LV_P, :, :L]
    logvar_r = out[O_LV_R, :, :L]
    z = out[O_Z, :, :Lh]
    return recon_x_p, recon_x_r, recon_u, mu_p, mu_r, logvar_p, logvar_r, z


# ----------------------------------------------------------------------------
# Host-side packing (features, noise, adjacencies, weights, biases)
# ----------------------------------------------------------------------------
def _pad_cols(a, width):
    return jnp.pad(a, ((0, 0), (0, width - a.shape[1])))


def _pad_square(w, width):
    return jnp.pad(w, ((0, width - w.shape[0]), (0, width - w.shape[1])))


def pack_features(x_p, x_r, P):
    return jnp.stack([_pad_cols(x_p, P), _pad_cols(x_r, P)]).astype(jnp.bfloat16)


def pack_eps(eps_p, eps_r, P):
    return jnp.stack([_pad_cols(eps_p, P), _pad_cols(eps_r, P)]).astype(jnp.float32)


def pack_adjacency(A_p, A_r):
    return jnp.stack([A_p, A_r]).astype(jnp.bfloat16)


def fuse_params(p, P):
    L = p["wdec"].shape[1]
    order = [
        p["wl1p"], p["wr1p"], p["wl1r"], p["wr1r"],
        p["wl2p"], p["wr2p"], p["wl3p"], p["wr3p"],
        p["wl2r"], p["wr2r"], p["wl3r"], p["wr3r"],
        p["wdec"][:L], p["wdec"][L:], p["wdec2"],
    ]
    assert len(order) == NUM_W
    w_slab = jnp.stack([_pad_square(w, P) for w in order]).astype(jnp.bfloat16)
    b_slab = jnp.concatenate(
        [_pad_cols(b, P) for b in
         [p["b1p"], p["b1r"], p["b2p"], p["b3p"], p["b2r"], p["b3r"],
          p["bdec"], p["bdec2"]]], axis=0).astype(jnp.float32)
    return w_slab, b_slab


# ----------------------------------------------------------------------------
# Graph utilities (host side): dense row-normalized adjacency == scatter-mean
# ----------------------------------------------------------------------------
def mean_adjacency(edge_index, num_nodes):
    src, dst = edge_index[0], edge_index[1]
    counts = jnp.zeros((num_nodes, num_nodes), jnp.float32).at[dst, src].add(1.0)
    deg = counts.sum(axis=1, keepdims=True)
    inv = jnp.where(deg > 0, 1.0 / jnp.maximum(deg, 1.0), 0.0)
    return counts * inv


def make_edges(key, num_nodes, extra):
    ring_src = jnp.arange(num_nodes, dtype=jnp.int32)
    ring_dst = (ring_src + 1) % num_nodes
    k1, k2 = jax.random.split(key)
    rs = jax.random.randint(k1, (extra,), 0, num_nodes, jnp.int32)
    rd = jax.random.randint(k2, (extra,), 0, num_nodes, jnp.int32)
    src = jnp.concatenate([ring_src, ring_dst, rs])
    dst = jnp.concatenate([ring_dst, ring_src, rd])
    return jnp.stack([src, dst])          # (2, E)


# ----------------------------------------------------------------------------
# Parameters (weights stored (in, out) = transpose of nn.Linear.weight)
# ----------------------------------------------------------------------------
def _q_bf16(a):
    # Round to bf16-representable f32 so the f32 reference and the bf16 kernel
    # see identical input values.
    return a.astype(jnp.bfloat16).astype(jnp.float32)


def init_raw_params(key, prot_dim, rna_dim, hidden_dim, latent_dim):
    keys = iter(jax.random.split(key, 64))

    def lin_w(fan_in, fan_out):
        bound = 1.0 / (fan_in ** 0.5)
        return _q_bf16(jax.random.uniform(next(keys), (fan_in, fan_out),
                                          jnp.float32, -bound, bound))

    def lin_b(fan_in, fan_out):
        bound = 1.0 / (fan_in ** 0.5)
        return jax.random.uniform(next(keys), (1, fan_out),
                                  jnp.float32, -bound, bound)

    p = {}

    def sage(name, fan_in, fan_out):
        p[f"wl{name}"] = lin_w(fan_in, fan_out)   # neighbor path (lin_l + bias)
        p[f"wr{name}"] = lin_w(fan_in, fan_out)   # root path     (lin_r)
        p[f"b{name}"] = lin_b(fan_in, fan_out)

    sage("1p", prot_dim, hidden_dim)
    sage("2p", hidden_dim, latent_dim)
    sage("3p", hidden_dim, latent_dim)
    sage("1r", rna_dim, hidden_dim)
    sage("2r", hidden_dim, latent_dim)
    sage("3r", hidden_dim, latent_dim)
    p["wdec"] = lin_w(2 * latent_dim, latent_dim)
    p["bdec"] = lin_b(2 * latent_dim, latent_dim)
    p["wdec2"] = lin_w(latent_dim, latent_dim // 2)
    p["bdec2"] = lin_b(latent_dim, latent_dim // 2)
    return p


# ----------------------------------------------------------------------------
# Pure-JAX f32 reference (module semantics) for sanity check
# ----------------------------------------------------------------------------
def graph_vae_reference(x_p, x_r, A_p, A_r, eps_p, eps_r, p):
    def sage(x, A, wl, wr, b):
        return (A @ x) @ wl + x @ wr + b

    h_p = jnp.maximum(sage(x_p, A_p, p["wl1p"], p["wr1p"], p["b1p"]), 0.0)
    h_r = jnp.maximum(sage(x_r, A_r, p["wl1r"], p["wr1r"], p["b1r"]), 0.0)
    mu_p = sage(h_p, A_p, p["wl2p"], p["wr2p"], p["b2p"])
    logvar_p = sage(h_p, A_p, p["wl3p"], p["wr3p"], p["b3p"])
    mu_r = sage(h_r, A_r, p["wl2r"], p["wr2r"], p["b2r"])
    logvar_r = sage(h_r, A_r, p["wl3r"], p["wr3r"], p["b3r"])
    z_p = mu_p + eps_p * jnp.exp(0.5 * logvar_p)
    z_r = mu_r + eps_r * jnp.exp(0.5 * logvar_r)
    z = jnp.concatenate([z_p, z_r], axis=1) @ p["wdec"] + p["bdec"]
    z = z @ p["wdec2"] + p["bdec2"]

    def decode(v):
        vn = v / (jnp.linalg.norm(v, axis=1, keepdims=True) + 1e-8)
        return vn @ vn.T

    return (decode(z_p), decode(z_r), decode(z),
            mu_p, mu_r, logvar_p, logvar_r, z)


if __name__ == "__main__":
    # Small shapes consistent with the module; prot & rna graphs share N
    # (required by torch.cat((z_p, z_r), dim=1) in concat_z).
    N = 32
    prot_dim, rna_dim = 40, 24
    hidden_dim, latent_dim = 64, 32
    P = max(prot_dim, rna_dim, hidden_dim, latent_dim)   # padded lane width

    key = jax.random.PRNGKey(0)
    k_par, k_xp, k_xr, k_ep, k_er, k_gp, k_gr = jax.random.split(key, 7)

    raw = init_raw_params(k_par, prot_dim, rna_dim, hidden_dim, latent_dim)

    # Features / adjacencies rounded to bf16-representable f32 so kernel and
    # reference consume identical values.
    x_p = _q_bf16(jax.random.normal(k_xp, (N, prot_dim), jnp.float32))
    x_r = _q_bf16(jax.random.normal(k_xr, (N, rna_dim), jnp.float32))
    # torch.randn_like noise for reparameterize, generated host-side so the
    # kernel stays deterministic / testable.
    eps_p = jax.random.normal(k_ep, (N, latent_dim), jnp.float32)
    eps_r = jax.random.normal(k_er, (N, latent_dim), jnp.float32)

    edge_index_p = make_edges(k_gp, N, extra=3 * N)
    edge_index_r = make_edges(k_gr, N, extra=3 * N)
    A_p = _q_bf16(mean_adjacency(edge_index_p, N))
    A_r = _q_bf16(mean_adjacency(edge_index_r, N))

    # Pack the 5 kernel operands.
    x_slab = pack_features(x_p, x_r, P)
    a_slab = pack_adjacency(A_p, A_r)
    eps_slab = pack_eps(eps_p, eps_r, P)
    w_slab, b_slab = fuse_params(raw, P)

    outs = graph_vae_forward(x_slab, a_slab, eps_slab, w_slab, b_slab,
                             latent_dim=latent_dim)
    jax.block_until_ready(outs)

    refs = graph_vae_reference(x_p, x_r, A_p, A_r, eps_p, eps_r, raw)
    names = ["recon_x_p", "recon_x_r", "recon_u",
             "mu_p", "mu_r", "logvar_p", "logvar_r", "z"]
    for name, got, want in zip(names, outs, refs):
        assert jnp.allclose(got, want, atol=2e-2, rtol=2e-2), name

    print("KERNEL_OK")
</pallas_src>

<mosaic_0001>
module attributes {stable_mosaic.version = 11 : i64} {
  func.func @_graph_vae_kernel(%arg0: memref<2x32x64xbf16, #tpu.memory_space<vmem>>, %arg1: memref<2x32x32xbf16, #tpu.memory_space<vmem>>, %arg2: memref<2x32x64xf32, #tpu.memory_space<vmem>>, %arg3: memref<15x64x64xbf16, #tpu.memory_space<vmem>>, %arg4: memref<8x64xf32, #tpu.memory_space<vmem>>, %arg5: memref<8x32x128xf32, #tpu.memory_space<vmem>>) attributes {dimension_semantics = [], scalar_prefetch = 0 : i64, scratch_operands = 0 : i64, tpu.core_type = #tpu.core_type<tc>} {
    %c0 = arith.constant 0 : index
    %c0_0 = arith.constant 0 : index
    %c0_1 = arith.constant 0 : index
    %0 = vector.load %arg0[%c0, %c0_0, %c0_1] : memref<2x32x64xbf16, #tpu.memory_space<vmem>>, vector<1x32x64xbf16>
    %1 = vector.shape_cast %0 : vector<1x32x64xbf16> to vector<32x64xbf16>
    %c0_2 = arith.constant 0 : index
    %c0_3 = arith.constant 0 : index
    %c0_4 = arith.constant 0 : index
    %2 = vector.load %arg1[%c0_2, %c0_3, %c0_4] : memref<2x32x32xbf16, #tpu.memory_space<vmem>>, vector<1x32x32xbf16>
    %3 = vector.shape_cast %2 : vector<1x32x32xbf16> to vector<32x32xbf16>
    %cst = arith.constant dense<0.000000e+00> : vector<32x64xf32>
    %4 = tpu.matmul %3, %1, %cst {dimension_numbers = #tpu.dot_dimension_numbers<[1], [0], [0], [1], [0, 0, 1, 1], [], []>} : vector<32x32xbf16>, vector<32x64xbf16>, vector<32x64xf32> -> vector<32x64xf32>
    %5 = arith.truncf %4 : vector<32x64xf32> to vector<32x64xbf16>
    %c0_5 = arith.constant 0 : index
    %c0_6 = arith.constant 0 : index
    %c0_7 = arith.constant 0 : index
    %6 = vector.load %arg3[%c0_5, %c0_6, %c0_7] : memref<15x64x64xbf16, #tpu.memory_space<vmem>>, vector<1x64x64xbf16>
    %7 = vector.shape_cast %6 : vector<1x64x64xbf16> to vector<64x64xbf16>
    %cst_8 = arith.constant dense<0.000000e+00> : vector<32x64xf32>
    %8 = tpu.matmul %5, %7, %cst_8 {dimension_numbers = #tpu.dot_dimension_numbers<[1], [0], [0], [1], [0, 0, 1, 1], [], []>} : vector<32x64xbf16>, vector<64x64xbf16>, vector<32x64xf32> -> vector<32x64xf32>
    %c1 = arith.constant 1 : index
    %c0_9 = arith.constant 0 : index
    %c0_10 = arith.constant 0 : index
    %9 = vector.load %arg3[%c1, %c0_9, %c0_10] : memref<15x64x64xbf16, #tpu.memory_space<vmem>>, vector<1x64x64xbf16>
    %10 = vector.shape_cast %9 : vector<1x64x64xbf16> to vector<64x64xbf16>
    %cst_11 = arith.constant dense<0.000000e+00> : vector<32x64xf32>
    %11 = tpu.matmul %1, %10, %cst_11 {dimension_numbers = #tpu.dot_dimension_numbers<[1], [0], [0], [1], [0, 0, 1, 1], [], []>} : vector<32x64xbf16>, vector<64x64xbf16>, vector<32x64xf32> -> vector<32x64xf32>
    %12 = arith.addf %8, %11 : vector<32x64xf32>
    %c0_12 = arith.constant 0 : index
    %c0_13 = arith.constant 0 : index
    %13 = vector.load %arg4[%c0_12, %c0_13] : memref<8x64xf32, #tpu.memory_space<vmem>>, vector<1x64xf32>
    %14 = vector.broadcast %13 : vector<1x64xf32> to vector<32x64xf32>
    %15 = arith.addf %12, %14 : vector<32x64xf32>
    %cst_14 = arith.constant 0.000000e+00 : f32
    %16 = vector.broadcast %cst_14 : f32 to vector<32x64xf32>
    %17 = arith.maximumf %15, %16 : vector<32x64xf32>
    %18 = arith.truncf %17 : vector<32x64xf32> to vector<32x64xbf16>
    %cst_15 = arith.constant dense<0.000000e+00> : vector<32x64xf32>
    %19 = tpu.matmul %3, %18, %cst_15 {dimension_numbers = #tpu.dot_dimension_numbers<[1], [0], [0], [1], [0, 0, 1, 1], [], []>} : vector<32x32xbf16>, vector<32x64xbf16>, vector<32x64xf32> -> vector<32x64xf32>
    %20 = arith.truncf %19 : vector<32x64xf32> to vector<32x64xbf16>
    %c4 = arith.constant 4 : index
    %c0_16 = arith.constant 0 : index
    %c0_17 = arith.constant 0 : index
    %21 = vector.load %arg3[%c4, %c0_16, %c0_17] : memref<15x64x64xbf16, #tpu.memory_space<vmem>>, vector<1x64x64xbf16>
    %22 = vector.shape_cast %21 : vector<1x64x64xbf16> to vector<64x64xbf16>
    %cst_18 = arith.constant dense<0.000000e+00> : vector<32x64xf32>
    %23 = tpu.matmul %20, %22, %cst_18 {dimension_numbers = #tpu.dot_dimension_numbers<[1], [0], [0], [1], [0, 0, 1, 1], [], []>} : vector<32x64xbf16>, vector<64x64xbf16>, vector<32x64xf32> -> vector<32x64xf32>
    %c5 = arith.constant 5 : index
    %c0_19 = arith.constant 0 : index
    %c0_20 = arith.constant 0 : index
    %24 = vector.load %arg3[%c5, %c0_19, %c0_20] : memref<15x64x64xbf16, #tpu.memory_space<vmem>>, vector<1x64x64xbf16>
    %25 = vector.shape_cast %24 : vector<1x64x64xbf16> to vector<64x64xbf16>
    %cst_21 = arith.constant dense<0.000000e+00> : vector<32x64xf32>
    %26 = tpu.matmul %18, %25, %cst_21 {dimension_numbers = #tpu.dot_dimension_numbers<[1], [0], [0], [1], [0, 0, 1, 1], [], []>} : vector<32x64xbf16>, vector<64x64xbf16>, vector<32x64xf32> -> vector<32x64xf32>
    %27 = arith.addf %23, %26 : vector<32x64xf32>
    %c2 = arith.constant 2 : index
    %c0_22 = arith.constant 0 : index
    %28 = vector.load %arg4[%c2, %c0_22] : memref<8x64xf32, #tpu.memory_space<vmem>>, vector<1x64xf32>
    %29 = vector.broadcast %28 : vector<1x64xf32> to vector<32x64xf32>
    %30 = arith.addf %27, %29 : vector<32x64xf32>
    %c6 = arith.constant 6 : index
    %c0_23 = arith.constant 0 : index
    %c0_24 = arith.constant 0 : index
    %31 = vector.load %arg3[%c6, %c0_23, %c0_24] : memref<15x64x64xbf16, #tpu.memory_space<vmem>>, vector<1x64x64xbf16>
    %32 = vector.shape_cast %31 : vector<1x64x64xbf16> to vector<64x64xbf16>
    %cst_25 = arith.constant dense<0.000000e+00> : vector<32x64xf32>
    %33 = tpu.matmul %20, %32, %cst_25 {dimension_numbers = #tpu.dot_dimension_numbers<[1], [0], [0], [1], [0, 0, 1, 1], [], []>} : vector<32x64xbf16>, vector<64x64xbf16>, vector<32x64xf32> -> vector<32x64xf32>
    %c7 = arith.constant 7 : index
    %c0_26 = arith.constant 0 : index
    %c0_27 = arith.constant 0 : index
    %34 = vector.load %arg3[%c7, %c0_26, %c0_27] : memref<15x64x64xbf16, #tpu.memory_space<vmem>>, vector<1x64x64xbf16>
    %35 = vector.shape_cast %34 : vector<1x64x64xbf16> to vector<64x64xbf16>
    %cst_28 = arith.constant dense<0.000000e+00> : vector<32x64xf32>
    %36 = tpu.matmul %18, %35, %cst_28 {dimension_numbers = #tpu.dot_dimension_numbers<[1], [0], [0], [1], [0, 0, 1, 1], [], []>} : vector<32x64xbf16>, vector<64x64xbf16>, vector<32x64xf32> -> vector<32x64xf32>
    %37 = arith.addf %33, %36 : vector<32x64xf32>
    %c3 = arith.constant 3 : index
    %c0_29 = arith.constant 0 : index
    %38 = vector.load %arg4[%c3, %c0_29] : memref<8x64xf32, #tpu.memory_space<vmem>>, vector<1x64xf32>
    %39 = vector.broadcast %38 : vector<1x64xf32> to vector<32x64xf32>
    %40 = arith.addf %37, %39 : vector<32x64xf32>
    %c1_30 = arith.constant 1 : index
    %c0_31 = arith.constant 0 : index
    %c0_32 = arith.constant 0 : index
    %41 = vector.load %arg0[%c1_30, %c0_31, %c0_32] : memref<2x32x64xbf16, #tpu.memory_space<vmem>>, vector<1x32x64xbf16>
    %42 = vector.shape_cast %41 : vector<1x32x64xbf16> to vector<32x64xbf16>
    %c1_33 = arith.constant 1 : index
    %c0_34 = arith.constant 0 : index
    %c0_35 = arith.constant 0 : index
    %43 = vector.load %arg1[%c1_33, %c0_34, %c0_35] : memref<2x32x32xbf16, #tpu.memory_space<vmem>>, vector<1x32x32xbf16>
    %44 = vector.shape_cast %43 : vector<1x32x32xbf16> to vector<32x32xbf16>
    %cst_36 = arith.constant dense<0.000000e+00> : vector<32x64xf32>
    %45 = tpu.matmul %44, %42, %cst_36 {dimension_numbers = #tpu.dot_dimension_numbers<[1], [0], [0], [1], [0, 0, 1, 1], [], []>} : vector<32x32xbf16>, vector<32x64xbf16>, vector<32x64xf32> -> vector<32x64xf32>
    %46 = arith.truncf %45 : vector<32x64xf32> to vector<32x64xbf16>
    %c2_37 = arith.constant 2 : index
    %c0_38 = arith.constant 0 : index
    %c0_39 = arith.constant 0 : index
    %47 = vector.load %arg3[%c2_37, %c0_38, %c0_39] : memref<15x64x64xbf16, #tpu.memory_space<vmem>>, vector<1x64x64xbf16>
    %48 = vector.shape_cast %47 : vector<1x64x64xbf16> to vector<64x64xbf16>
    %cst_40 = arith.constant dense<0.000000e+00> : vector<32x64xf32>
    %49 = tpu.matmul %46, %48, %cst_40 {dimension_numbers = #tpu.dot_dimension_numbers<[1], [0], [0], [1], [0, 0, 1, 1], [], []>} : vector<32x64xbf16>, vector<64x64xbf16>, vector<32x64xf32> -> vector<32x64xf32>
    %c3_41 = arith.constant 3 : index
    %c0_42 = arith.constant 0 : index
    %c0_43 = arith.constant 0 : index
    %50 = vector.load %arg3[%c3_41, %c0_42, %c0_43] : memref<15x64x64xbf16, #tpu.memory_space<vmem>>, vector<1x64x64xbf16>
    %51 = vector.shape_cast %50 : vector<1x64x64xbf16> to vector<64x64xbf16>
    %cst_44 = arith.constant dense<0.000000e+00> : vector<32x64xf32>
    %52 = tpu.matmul %42, %51, %cst_44 {dimension_numbers = #tpu.dot_dimension_numbers<[1], [0], [0], [1], [0, 0, 1, 1], [], []>} : vector<32x64xbf16>, vector<64x64xbf16>, vector<32x64xf32> -> vector<32x64xf32>
    %53 = arith.addf %49, %52 : vector<32x64xf32>
    %c1_45 = arith.constant 1 : index
    %c0_46 = arith.constant 0 : index
    %54 = vector.load %arg4[%c1_45, %c0_46] : memref<8x64xf32, #tpu.memory_space<vmem>>, vector<1x64xf32>
    %55 = vector.broadcast %54 : vector<1x64xf32> to vector<32x64xf32>
    %56 = arith.addf %53, %55 : vector<32x64xf32>
    %cst_47 = arith.constant 0.000000e+00 : f32
    %57 = vector.broadcast %cst_47 : f32 to vector<32x64xf32>
    %58 = arith.maximumf %56, %57 : vector<32x64xf32>
    %59 = arith.truncf %58 : vector<32x64xf32> to vector<32x64xbf16>
    %cst_48 = arith.constant dense<0.000000e+00> : vector<32x64xf32>
    %60 = tpu.matmul %44, %59, %cst_48 {dimension_numbers = #tpu.dot_dimension_numbers<[1], [0], [0], [1], [0, 0, 1, 1], [], []>} : vector<32x32xbf16>, vector<32x64xbf16>, vector<32x64xf32> -> vector<32x64xf32>
    %61 = arith.truncf %60 : vector<32x64xf32> to vector<32x64xbf16>
    %c8 = arith.constant 8 : index
    %c0_49 = arith.constant 0 : index
    %c0_50 = arith.constant 0 : index
    %62 = vector.load %arg3[%c8, %c0_49, %c0_50] : memref<15x64x64xbf16, #tpu.memory_space<vmem>>, vector<1x64x64xbf16>
    %63 = vector.shape_cast %62 : vector<1x64x64xbf16> to vector<64x64xbf16>
    %cst_51 = arith.constant dense<0.000000e+00> : vector<32x64xf32>
    %64 = tpu.matmul %61, %63, %cst_51 {dimension_numbers = #tpu.dot_dimension_numbers<[1], [0], [0], [1], [0, 0, 1, 1], [], []>} : vector<32x64xbf16>, vector<64x64xbf16>, vector<32x64xf32> -> vector<32x64xf32>
    %c9 = arith.constant 9 : index
    %c0_52 = arith.constant 0 : index
    %c0_53 = arith.constant 0 : index
    %65 = vector.load %arg3[%c9, %c0_52, %c0_53] : memref<15x64x64xbf16, #tpu.memory_space<vmem>>, vector<1x64x64xbf16>
    %66 = vector.shape_cast %65 : vector<1x64x64xbf16> to vector<64x64xbf16>
    %cst_54 = arith.constant dense<0.000000e+00> : vector<32x64xf32>
    %67 = tpu.matmul %59, %66, %cst_54 {dimension_numbers = #tpu.dot_dimension_numbers<[1], [0], [0], [1], [0, 0, 1, 1], [], []>} : vector<32x64xbf16>, vector<64x64xbf16>, vector<32x64xf32> -> vector<32x64xf32>
    %68 = arith.addf %64, %67 : vector<32x64xf32>
    %c4_55 = arith.constant 4 : index
    %c0_56 = arith.constant 0 : index
    %69 = vector.load %arg4[%c4_55, %c0_56] : memref<8x64xf32, #tpu.memory_space<vmem>>, vector<1x64xf32>
    %70 = vector.broadcast %69 : vector<1x64xf32> to vector<32x64xf32>
    %71 = arith.addf %68, %70 : vector<32x64xf32>
    %c10 = arith.constant 10 : index
    %c0_57 = arith.constant 0 : index
    %c0_58 = arith.constant 0 : index
    %72 = vector.load %arg3[%c10, %c0_57, %c0_58] : memref<15x64x64xbf16, #tpu.memory_space<vmem>>, vector<1x64x64xbf16>
    %73 = vector.shape_cast %72 : vector<1x64x64xbf16> to vector<64x64xbf16>
    %cst_59 = arith.constant dense<0.000000e+00> : vector<32x64xf32>
    %74 = tpu.matmul %61, %73, %cst_59 {dimension_numbers = #tpu.dot_dimension_numbers<[1], [0], [0], [1], [0, 0, 1, 1], [], []>} : vector<32x64xbf16>, vector<64x64xbf16>, vector<32x64xf32> -> vector<32x64xf32>
    %c11 = arith.constant 11 : index
    %c0_60 = arith.constant 0 : index
    %c0_61 = arith.constant 0 : index
    %75 = vector.load %arg3[%c11, %c0_60, %c0_61] : memref<15x64x64xbf16, #tpu.memory_space<vmem>>, vector<1x64x64xbf16>
    %76 = vector.shape_cast %75 : vector<1x64x64xbf16> to vector<64x64xbf16>
    %cst_62 = arith.constant dense<0.000000e+00> : vector<32x64xf32>
    %77 = tpu.matmul %59, %76, %cst_62 {dimension_numbers = #tpu.dot_dimension_numbers<[1], [0], [0], [1], [0, 0, 1, 1], [], []>} : vector<32x64xbf16>, vector<64x64xbf16>, vector<32x64xf32> -> vector<32x64xf32>
    %78 = arith.addf %74, %77 : vector<32x64xf32>
    %c5_63 = arith.constant 5 : index
    %c0_64 = arith.constant 0 : index
    %79 = vector.load %arg4[%c5_63, %c0_64] : memref<8x64xf32, #tpu.memory_space<vmem>>, vector<1x64xf32>
    %80 = vector.broadcast %79 : vector<1x64xf32> to vector<32x64xf32>
    %81 = arith.addf %78, %80 : vector<32x64xf32>
    %c0_65 = arith.constant 0 : index
    %c0_66 = arith.constant 0 : index
    %c0_67 = arith.constant 0 : index
    %82 = vector.load %arg2[%c0_65, %c0_66, %c0_67] : memref<2x32x64xf32, #tpu.memory_space<vmem>>, vector<1x32x64xf32>
    %83 = vector.shape_cast %82 : vector<1x32x64xf32> to vector<32x64xf32>
    %cst_68 = arith.constant 5.000000e-01 : f32
    %84 = vector.broadcast %cst_68 : f32 to vector<32x64xf32>
    %85 = arith.mulf %84, %40 : vector<32x64xf32>
    %86 = math.exp %85 : vector<32x64xf32>
    %87 = arith.mulf %83, %86 : vector<32x64xf32>
    %88 = arith.addf %30, %87 : vector<32x64xf32>
    %c1_69 = arith.constant 1 : index
    %c0_70 = arith.constant 0 : index
    %c0_71 = arith.constant 0 : index
    %89 = vector.load %arg2[%c1_69, %c0_70, %c0_71] : memref<2x32x64xf32, #tpu.memory_space<vmem>>, vector<1x32x64xf32>
    %90 = vector.shape_cast %89 : vector<1x32x64xf32> to vector<32x64xf32>
    %cst_72 = arith.constant 5.000000e-01 : f32
    %91 = vector.broadcast %cst_72 : f32 to vector<32x64xf32>
    %92 = arith.mulf %91, %81 : vector<32x64xf32>
    %93 = math.exp %92 : vector<32x64xf32>
    %94 = arith.mulf %90, %93 : vector<32x64xf32>
    %95 = arith.addf %71, %94 : vector<32x64xf32>
    %96 = arith.truncf %88 : vector<32x64xf32> to vector<32x64xbf16>
    %c12 = arith.constant 12 : index
    %c0_73 = arith.constant 0 : index
    %c0_74 = arith.constant 0 : index
    %97 = vector.load %arg3[%c12, %c0_73, %c0_74] : memref<15x64x64xbf16, #tpu.memory_space<vmem>>, vector<1x64x64xbf16>
    %98 = vector.shape_cast %97 : vector<1x64x64xbf16> to vector<64x64xbf16>
    %cst_75 = arith.constant dense<0.000000e+00> : vector<32x64xf32>
    %99 = tpu.matmul %96, %98, %cst_75 {dimension_numbers = #tpu.dot_dimension_numbers<[1], [0], [0], [1], [0, 0, 1, 1], [], []>} : vector<32x64xbf16>, vector<64x64xbf16>, vector<32x64xf32> -> vector<32x64xf32>
    %100 = arith.truncf %95 : vector<32x64xf32> to vector<32x64xbf16>
    %c13 = arith.constant 13 : index
    %c0_76 = arith.constant 0 : index
    %c0_77 = arith.constant 0 : index
    %101 = vector.load %arg3[%c13, %c0_76, %c0_77] : memref<15x64x64xbf16, #tpu.memory_space<vmem>>, vector<1x64x64xbf16>
    %102 = vector.shape_cast %101 : vector<1x64x64xbf16> to vector<64x64xbf16>
    %cst_78 = arith.constant dense<0.000000e+00> : vector<32x64xf32>
    %103 = tpu.matmul %100, %102, %cst_78 {dimension_numbers = #tpu.dot_dimension_numbers<[1], [0], [0], [1], [0, 0, 1, 1], [], []>} : vector<32x64xbf16>, vector<64x64xbf16>, vector<32x64xf32> -> vector<32x64xf32>
    %104 = arith.addf %99, %103 : vector<32x64xf32>
    %c6_79 = arith.constant 6 : index
    %c0_80 = arith.constant 0 : index
    %105 = vector.load %arg4[%c6_79, %c0_80] : memref<8x64xf32, #tpu.memory_space<vmem>>, vector<1x64xf32>
    %106 = vector.broadcast %105 : vector<1x64xf32> to vector<32x64xf32>
    %107 = arith.addf %104, %106 : vector<32x64xf32>
    %108 = arith.truncf %107 : vector<32x64xf32> to vector<32x64xbf16>
    %c14 = arith.constant 14 : index
    %c0_81 = arith.constant 0 : index
    %c0_82 = arith.constant 0 : index
    %109 = vector.load %arg3[%c14, %c0_81, %c0_82] : memref<15x64x64xbf16, #tpu.memory_space<vmem>>, vector<1x64x64xbf16>
    %110 = vector.shape_cast %109 : vector<1x64x64xbf16> to vector<64x64xbf16>
    %cst_83 = arith.constant dense<0.000000e+00> : vector<32x64xf32>
    %111 = tpu.matmul %108, %110, %cst_83 {dimension_numbers = #tpu.dot_dimension_numbers<[1], [0], [0], [1], [0, 0, 1, 1], [], []>} : vector<32x64xbf16>, vector<64x64xbf16>, vector<32x64xf32> -> vector<32x64xf32>
    %c7_84 = arith.constant 7 : index
    %c0_85 = arith.constant 0 : index
    %112 = vector.load %arg4[%c7_84, %c0_85] : memref<8x64xf32, #tpu.memory_space<vmem>>, vector<1x64xf32>
    %113 = vector.broadcast %112 : vector<1x64xf32> to vector<32x64xf32>
    %114 = arith.addf %111, %113 : vector<32x64xf32>
    %115 = arith.mulf %88, %88 : vector<32x64xf32>
    %cst_86 = arith.constant dense<0.000000e+00> : vector<32xf32>
    %116 = vector.multi_reduction <add>, %115, %cst_86 [1] : vector<32x64xf32> to vector<32xf32>
    %117 = vector.shape_cast %116 : vector<32xf32> to vector<32x1xf32>
    %cst_87 = arith.constant 1.000000e-16 : f32
    %118 = vector.broadcast %cst_87 : f32 to vector<32x1xf32>
    %119 = arith.addf %117, %118 : vector<32x1xf32>
    %120 = math.rsqrt %119 : vector<32x1xf32>
    %121 = vector.broadcast %120 : vector<32x1xf32> to vector<32x64xf32>
    %122 = arith.mulf %88, %121 : vector<32x64xf32>
    %cst_88 = arith.constant dense<0.000000e+00> : vector<32x32xf32>
    %123 = tpu.matmul %122, %122, %cst_88 {dimension_numbers = #tpu.dot_dimension_numbers<[1], [1], [0], [0], [0, 0, 1, 0], [], []>} : vector<32x64xf32>, vector<32x64xf32>, vector<32x32xf32> -> vector<32x32xf32>
    %c0_89 = arith.constant 0 : index
    %c0_90 = arith.constant 0 : index
    %c0_91 = arith.constant 0 : index
    %124 = vector.load %arg5[%c0_89, %c0_90, %c0_91] : memref<8x32x128xf32, #tpu.memory_space<vmem>>, vector<1x32x32xf32>
    %125 = vector.shape_cast %124 : vector<1x32x32xf32> to vector<32x32xf32>
    %126 = vector.shape_cast %123 : vector<32x32xf32> to vector<1x32x32xf32>
    tpu.vector_store %arg5[%c0_89, %c0_90, %c0_91], %126 {strides = array<i32>} : memref<8x32x128xf32, #tpu.memory_space<vmem>>, vector<1x32x32xf32>,
    %127 = arith.mulf %95, %95 : vector<32x64xf32>
    %cst_92 = arith.constant dense<0.000000e+00> : vector<32xf32>
    %128 = vector.multi_reduction <add>, %127, %cst_92 [1] : vector<32x64xf32> to vector<32xf32>
    %129 = vector.shape_cast %128 : vector<32xf32> to vector<32x1xf32>
    %cst_93 = arith.constant 1.000000e-16 : f32
    %130 = vector.broadcast %cst_93 : f32 to vector<32x1xf32>
    %131 = arith.addf %129, %130 : vector<32x1xf32>
    %132 = math.rsqrt %131 : vector<32x1xf32>
    %133 = vector.broadcast %132 : vector<32x1xf32> to vector<32x64xf32>
    %134 = arith.mulf %95, %133 : vector<32x64xf32>
    %cst_94 = arith.constant dense<0.000000e+00> : vector<32x32xf32>
    %135 = tpu.matmul %134, %134, %cst_94 {dimension_numbers = #tpu.dot_dimension_numbers<[1], [1], [0], [0], [0, 0, 1, 0], [], []>} : vector<32x64xf32>, vector<32x64xf32>, vector<32x32xf32> -> vector<32x32xf32>
    %c1_95 = arith.constant 1 : index
    %c0_96 = arith.constant 0 : index
    %c0_97 = arith.constant 0 : index
    %136 = vector.load %arg5[%c1_95, %c0_96, %c0_97] : memref<8x32x128xf32, #tpu.memory_space<vmem>>, vector<1x32x32xf32>
    %137 = vector.shape_cast %136 : vector<1x32x32xf32> to vector<32x32xf32>
    %138 = vector.shape_cast %135 : vector<32x32xf32> to vector<1x32x32xf32>
    tpu.vector_store %arg5[%c1_95, %c0_96, %c0_97], %138 {strides = array<i32>} : memref<8x32x128xf32, #tpu.memory_space<vmem>>, vector<1x32x32xf32>,
    %139 = arith.mulf %114, %114 : vector<32x64xf32>
    %cst_98 = arith.constant dense<0.000000e+00> : vector<32xf32>
    %140 = vector.multi_reduction <add>, %139, %cst_98 [1] : vector<32x64xf32> to vector<32xf32>
    %141 = vector.shape_cast %140 : vector<32xf32> to vector<32x1xf32>
    %cst_99 = arith.constant 1.000000e-16 : f32
    %142 = vector.broadcast %cst_99 : f32 to vector<32x1xf32>
    %143 = arith.addf %141, %142 : vector<32x1xf32>
    %144 = math.rsqrt %143 : vector<32x1xf32>
    %145 = vector.broadcast %144 : vector<32x1xf32> to vector<32x64xf32>
    %146 = arith.mulf %114, %145 : vector<32x64xf32>
    %cst_100 = arith.constant dense<0.000000e+00> : vector<32x32xf32>
    %147 = tpu.matmul %146, %146, %cst_100 {dimension_numbers = #tpu.dot_dimension_numbers<[1], [1], [0], [0], [0, 0, 1, 0], [], []>} : vector<32x64xf32>, vector<32x64xf32>, vector<32x32xf32> -> vector<32x32xf32>
    %c2_101 = arith.constant 2 : index
    %c0_102 = arith.constant 0 : index
    %c0_103 = arith.constant 0 : index
    %148 = vector.load %arg5[%c2_101, %c0_102, %c0_103] : memref<8x32x128xf32, #tpu.memory_space<vmem>>, vector<1x32x32xf32>
    %149 = vector.shape_cast %148 : vector<1x32x32xf32> to vector<32x32xf32>
    %150 = vector.shape_cast %147 : vector<32x32xf32> to vector<1x32x32xf32>
    tpu.vector_store %arg5[%c2_101, %c0_102, %c0_103], %150 {strides = array<i32>} : memref<8x32x128xf32, #tpu.memory_space<vmem>>, vector<1x32x32xf32>,
    %c3_104 = arith.constant 3 : index
    %c0_105 = arith.constant 0 : index
    %c0_106 = arith.constant 0 : index
    %151 = vector.load %arg5[%c3_104, %c0_105, %c0_106] : memref<8x32x128xf32, #tpu.memory_space<vmem>>, vector<1x32x64xf32>
    %152 = vector.shape_cast %151 : vector<1x32x64xf32> to vector<32x64xf32>
    %153 = vector.shape_cast %30 : vector<32x64xf32> to vector<1x32x64xf32>
    tpu.vector_store %arg5[%c3_104, %c0_105, %c0_106], %153 {strides = array<i32>} : memref<8x32x128xf32, #tpu.memory_space<vmem>>, vector<1x32x64xf32>,
    %c4_107 = arith.constant 4 : index
    %c0_108 = arith.constant 0 : index
    %c0_109 = arith.constant 0 : index
    %154 = vector.load %arg5[%c4_107, %c0_108, %c0_109] : memref<8x32x128xf32, #tpu.memory_space<vmem>>, vector<1x32x64xf32>
    %155 = vector.shape_cast %154 : vector<1x32x64xf32> to vector<32x64xf32>
    %156 = vector.shape_cast %71 : vector<32x64xf32> to vector<1x32x64xf32>
    tpu.vector_store %arg5[%c4_107, %c0_108, %c0_109], %156 {strides = array<i32>} : memref<8x32x128xf32, #tpu.memory_space<vmem>>, vector<1x32x64xf32>,
    %c5_110 = arith.constant 5 : index
    %c0_111 = arith.constant 0 : index
    %c0_112 = arith.constant 0 : index
    %157 = vector.load %arg5[%c5_110, %c0_111, %c0_112] : memref<8x32x128xf32, #tpu.memory_space<vmem>>, vector<1x32x64xf32>
    %158 = vector.shape_cast %157 : vector<1x32x64xf32> to vector<32x64xf32>
    %159 = vector.shape_cast %40 : vector<32x64xf32> to vector<1x32x64xf32>
    tpu.vector_store %arg5[%c5_110, %c0_111, %c0_112], %159 {strides = array<i32>} : memref<8x32x128xf32, #tpu.memory_space<vmem>>, vector<1x32x64xf32>,
    %c6_113 = arith.constant 6 : index
    %c0_114 = arith.constant 0 : index
    %c0_115 = arith.constant 0 : index
    %160 = vector.load %arg5[%c6_113, %c0_114, %c0_115] : memref<8x32x128xf32, #tpu.memory_space<vmem>>, vector<1x32x64xf32>
    %161 = vector.shape_cast %160 : vector<1x32x64xf32> to vector<32x64xf32>
    %162 = vector.shape_cast %81 : vector<32x64xf32> to vector<1x32x64xf32>
    tpu.vector_store %arg5[%c6_113, %c0_114, %c0_115], %162 {strides = array<i32>} : memref<8x32x128xf32, #tpu.memory_space<vmem>>, vector<1x32x64xf32>,
    %c7_116 = arith.constant 7 : index
    %c0_117 = arith.constant 0 : index
    %c0_118 = arith.constant 0 : index
    %163 = vector.load %arg5[%c7_116, %c0_117, %c0_118] : memref<8x32x128xf32, #tpu.memory_space<vmem>>, vector<1x32x64xf32>
    %164 = vector.shape_cast %163 : vector<1x32x64xf32> to vector<32x64xf32>
    %165 = vector.shape_cast %114 : vector<32x64xf32> to vector<1x32x64xf32>
    tpu.vector_store %arg5[%c7_116, %c0_117, %c0_118], %165 {strides = array<i32>} : memref<8x32x128xf32, #tpu.memory_space<vmem>>, vector<1x32x64xf32>,
    return
  }
}

</mosaic_0001>

<bundles_post_ra>
// kernel: tpu_custom_call.1
= control target key start
LH: loop header
LB: loop body
LE: loop exit
PB: predicated region body
PF: predicated region fallthrough
CT: control target
= control target key end

     0   :  { %10 = vsyncpa [#allocation3], 0  ;;  %s2536_s0 = inlined_call_operand.hbm [shape: bf16[2,32,64], index: 0, kind: input, shape index: {}]   ;;  %s2537_s1 = inlined_call_operand.hbm [shape: bf16[2,32,32], index: 1, kind: input, shape index: {}]   ;;  %s2538_s2 = inlined_call_operand.hbm [shape: f32[2,32,64], index: 2, kind: input, shape index: {}]   ;;  %s2539_s3 = inlined_call_operand.hbm [shape: bf16[15,64,64], index: 3, kind: input, shape index: {}]   ;;  %s2540_s4 = inlined_call_operand.hbm [shape: f32[8,64], index: 4, kind: input, shape index: {}]   ;;  %s2541_s5 = inlined_call_operand.hbm [shape: f32[8,32,128], index: 5, kind: output, shape index: {}]  }
   0x1   :  { %11 = vsyncpa [#allocation6], 0 }
   0x2   :  { %12 = vsyncpa [#allocation9], 0 }
   0x3   :  { %13 = vsyncpa [#allocation4], 0  ;;  %s31_s20 = sshll.u32 %s2537_s1, 4  ;;  %s2205_s21 = smov [#allocation5]   ;;  %s32_s20 = int_to_ptr.hbm [resolvable:$true] %s31_s20 }
   0x4   :  { %s33_s22 = sshll.u32 %s2205_s21, 4  ;;  %s57_s25 = sshll.u32 %s2539_s3, 4  ;;  %s34_s22 = int_to_ptr.vmem [resolvable:$true] %s33_s22  ;;  %s58_s25 = int_to_ptr.hbm [resolvable:$true] %s57_s25 }
   0x5   :  { %s2206_s26 = smov 64   ;;  %s2207_s27 = smov 4  }
   0x6   :  { %39 = dma.hbm_to_vmem [thread:$0]  %s32_s20, 512, %s34_s22, [#allocation6], %s2206_s26, %s2206_s26, %s2207_s27  }
   0x7   :  { %s2208_s28 = smov [#allocation8]   ;;  %s18_s7 = sshll.u32 %s2536_s0, 4  ;;  %s19_s7 = int_to_ptr.hbm [resolvable:$true] %s18_s7 }
   0x8   :  { %s59_s29 = sshll.u32 %s2208_s28, 4  ;;  %s44_s9 = sshll.u32 %s2538_s2, 4  ;;  %s60_s29 = int_to_ptr.vmem [resolvable:$true] %s59_s29  ;;  %s45_s9 = int_to_ptr.hbm [resolvable:$true] %s44_s9 }
   0x9   :  { %65 = dma.hbm_to_vmem [thread:$0]  %s58_s25, 7680, %s60_s29, [#allocation9], %s2206_s26, %s2206_s26, %s2207_s27  }
   0xa   :  { %s2209_s10 = smov [#allocation2]   ;;  %s2210_s3 = smov [#allocation7]  }
   0xb   :  { %s20_s11 = sshll.u32 %s2209_s10, 4  ;;  %s46_s12 = sshll.u32 %s2210_s3, 4  ;;  %s21_s11 = int_to_ptr.vmem [resolvable:$true] %s20_s11  ;;  %s47_s12 = int_to_ptr.vmem [resolvable:$true] %s46_s12 }
   0xc   :  { %26 = dma.hbm_to_vmem [thread:$0]  %s19_s7, 512, %s21_s11, [#allocation3], %s2206_s26, %s2206_s26, %s2207_s27  }
   0xd   :  { %s2211_s13 = smov 128   ;;  %s2212_s14 = smov 8  }
   0xe   :  { %52 = dma.hbm_to_vmem [thread:$0]  %s45_s9, 1024, %s47_s12, [#allocation6], %s2211_s13, %s2211_s13, %s2212_s14  }
   0xf   :  { %s71_s16 = sshll.u32 %s2540_s4, 4  ;;  %s2213_s2 = smov [#allocation10]   ;;  %s72_s16 = int_to_ptr.hbm [resolvable:$true] %s71_s16 }
  0x10   :  { %s73_s17 = sshll.u32 %s2213_s2, 4  ;;  %s74_s17 = int_to_ptr.vmem [resolvable:$true] %s73_s17 }
  0x11   :  { %76 = dma.hbm_to_vmem [thread:$0]  %s72_s16, 128, %s74_s17, [#allocation9]  }
  0x12   :  { %2197 = dma.done.wait [#allocation3], 512  }
  0x13   :  { %2198 = vsyncadd [#allocation3], 4294966784 }
  0x14   :  { %2199 = dma.done.wait [#allocation6], 1536  }
  0x15   :  { %2200 = vsyncadd [#allocation6], 4294965760 }
  0x16   :  { %2201 = dma.done.wait [#allocation9], 7808  }
  0x17   :  { %2202 = vsyncadd [#allocation9], 4294959488  ;;  %v1924_v0 = vld [vmem:[#allocation2 + $0x8] sm:$0xff]  ;;  %v1923_v1 = vld [vmem:[#allocation2] sm:$0xff]  ;;  %vm128_vm0 = vcmask 261120   ;;  %vm197_vm1 = vcmask 523264  }
  0x18   :  { %v1930_v2 = vld [vmem:[#allocation8 + $0x18] sm:$0xff]  ;;  %141 = vmatpush.bf16.msra.mxu0 %v1924_v0  ;;  %1991 = vmatpush.bf16.msra.mxu1 %v1924_v0  ;;  %v2263_v4 = vld [vmem:[#allocation5] sm:$0xff]  ;;  %v2265_v5 = vld [vmem:[#allocation5 + $0x8] sm:$0xff]  ;;  %s2214_s4 = smov [#allocation11]   ;;  %s1574_s21 = sshll.u32 %s2541_s5, 4  ;;  %s1575_s21 = int_to_ptr.hbm [resolvable:$true] %s1574_s21 }
  0x19   :  { %v1934_v3 = vld [vmem:[#allocation8 + $0x38] sm:$0xff]  ;;  %257 = vmatpush.bf16.msra.mxu2 %v1930_v2  ;;  %v1933_v6 = vld [vmem:[#allocation8 + $0x30] sm:$0xff]  ;;  %v1932_v8 = vld [vmem:[#allocation8 + $0x28] sm:$0xff]  ;;  %s1572_s18 = sshll.u32 %s2214_s4, 4  ;;  %s1573_s18 = int_to_ptr.vmem [resolvable:$true] %s1572_s18 }
  0x1a   :  { %v1929_v7 = vld [vmem:[#allocation8 + $0x10] sm:$0xff]  ;;  %v1928_v9 = vld [vmem:[#allocation8 + $0x8] sm:$0xff]  ;;  %v1931_v10 = vld [vmem:[#allocation8 + $0x20] sm:$0xff] }
  0x1b   :  { %v1927_v11 = vld [vmem:[#allocation8] sm:$0xff]  ;;  %v1942_v18 = vld [vmem:[#allocation8 + $0xb8] sm:$0xff]  ;;  %v1941_v20 = vld [vmem:[#allocation8 + $0xb0] sm:$0xff] }
  0x1c   :  { %142 = vmatpush.bf16.msra.mxu0 %v1923_v1  ;;  %1992 = vmatpush.bf16.msra.mxu1 %v1923_v1  ;;  %v1950_v19 = vld [vmem:[#allocation8 + $0xf8] sm:$0xff]  ;;  %v1949_v21 = vld [vmem:[#allocation8 + $0xf0] sm:$0xff]  ;;  %v1940_v22 = vld [vmem:[#allocation8 + $0xa8] sm:$0xff] }
  0x1d   :  { %258 = vmatpush.bf16.msra.mxu2 %v1929_v7  ;;  %v1948_v23 = vld [vmem:[#allocation8 + $0xe8] sm:$0xff]  ;;  %v1939_v24 = vld [vmem:[#allocation8 + $0xa0] sm:$0xff]  ;;  %v2275_v32 = vld [vmem:[#allocation2 + $0x18] sm:$0xff] }
  0x1e   :  { %v1947_v25 = vld [vmem:[#allocation8 + $0xe0] sm:$0xff]  ;;  %v2278_v35 = vld [vmem:[#allocation2 + $0x10] sm:$0xff]  ;;  %v2293_v52 = vld [vmem:[#allocation5 + $0x18] sm:$0xff] }
  0x1f   :  { %1605 = vmatmul.msk.bf16.vlgmr.msra.gmra.mxu0 %vm128_vm0, %v2263_v4  ;;  %1606 = vmatmul.msk.bf16.vlgmr.msra.gmra.mxu1 %vm128_vm0, %v2265_v5  ;;  %v2005_v30 = vld [vmem:[#allocation10] ss:$0 sm:$0xff]  ;;  %v2289_v51 = vld [vmem:[#allocation5 + $0x10] sm:$0xff]  ;;  %v1938_v53 = vld [vmem:[#allocation8 + $0x98] sm:$0xff] }
  0x20   :  { %208 = vmatpush.bf16.msrb.mxu1 %v1934_v3  ;;  %357 = vmatpush.bf16.msrb.mxu0 %v1942_v18  ;;  %v1946_v54 = vld [vmem:[#allocation8 + $0xd8] sm:$0xff]  ;;  %v1937_v55 = vld [vmem:[#allocation8 + $0x90] sm:$0xff]  ;;  %v1936_v57 = vld [vmem:[#allocation8 + $0x88] sm:$0xff] }
  0x21   :  { %259 = vmatpush.bf16.msra.mxu2 %v1928_v9  ;;  %v1945_v56 = vld [vmem:[#allocation8 + $0xd0] sm:$0xff]  ;;  %v1944_v58 = vld [vmem:[#allocation8 + $0xc8] sm:$0xff]  ;;  %v1935_v60 = vld [vmem:[#allocation8 + $0x80] sm:$0xff] }
  0x22   :  { %v1943_v61 = vld [vmem:[#allocation8 + $0xc0] sm:$0xff]  ;;  %v1958_v63 = vld [vmem:[#allocation8 + $0x58] sm:$0xff] }
  0x23   :  { %v1962_v3 = vld [vmem:[#allocation8 + $0x78] sm:$0xff] }
  0x24   :  { %209 = vmatpush.bf16.msrb.mxu1 %v1933_v6  ;;  %358 = vmatpush.bf16.msrb.mxu0 %v1941_v20  ;;  %v1961_v6 = vld [vmem:[#allocation8 + $0x70] sm:$0xff] }
  0x25   :  { %260 = vmatpush.bf16.msra.mxu2 %v1927_v11 }
  0x28   :  { %210 = vmatpush.bf16.msrb.mxu1 %v1932_v8  ;;  %359 = vmatpush.bf16.msrb.mxu0 %v1940_v22  ;;  %v1960_v8 = vld [vmem:[#allocation8 + $0x68] sm:$0xff] }
  0x2c   :  { %211 = vmatpush.bf16.msrb.mxu1 %v1931_v10  ;;  %360 = vmatpush.bf16.msrb.mxu0 %v1939_v24  ;;  %v1959_v10 = vld [vmem:[#allocation8 + $0x60] sm:$0xff] }
  0x2d   :  { %v2315_v24 = vld [vmem:[#allocation10 + $0x3] ss:$0 sm:$0xff] }
  0x2f   :  { %1623 = vmatmul.msk.bf16.vlgmr.msrb.gmra.mxu1 %vm197_vm1, %v1923_v1  ;;  %v1956_v1 = vld [vmem:[#allocation8 + $0x48] sm:$0xff] }
  0x30   :  { %473 = vmatpush.bf16.msra.mxu1 %v1950_v19  ;;  %581 = vmatpush.bf16.msra.mxu0 %v2275_v32 }
  0x34   :  { %474 = vmatpush.bf16.msra.mxu1 %v1949_v21  ;;  %582 = vmatpush.bf16.msra.mxu0 %v2278_v35 }
  0x38   :  { %475 = vmatpush.bf16.msra.mxu1 %v1948_v23  ;;  %v2313_v23 = vld [vmem:[#allocation10 + $0x2] ss:$0 sm:$0xff] }
  0x3c   :  { %476 = vmatpush.bf16.msra.mxu1 %v1947_v25 }
  0x3f   :  { %1624 = vmatmul.msk.bf16.gmra.mxu1 %vm197_vm1, %v1924_v0  ;;  %v1957_v0 = vld [vmem:[#allocation8 + $0x50] sm:$0xff] }
  0x40   :  { %697 = vmatpush.bf16.msrb.mxu1 %v1958_v63 }
  0x44   :  { %698 = vmatpush.bf16.msrb.mxu1 %v1957_v0  ;;  %v978_v0 = vld [vmem:[#allocation7 + $0x8] sm:$0xff] }
  0x48   :  { %699 = vmatpush.bf16.msrb.mxu1 %v1956_v1 }
  0x9c   :  { %v144_v12 = vpop.f32.mrf.mxu0  ;;  %v149_v15 = vpop.f32.mrf.mxu1 }
  0xa4   :  { %v146_v13 = vpop.f32.mrf.mxu0  ;;  %v151_v16 = vpop.f32.mrf.mxu1 }
  0xa5   :  { %v154_v14 = vpack.c.bf16 %v146_v13, %v144_v12  ;;  %v155_v17 = vpack.c.bf16 %v151_v16, %v149_v15 }
  0xa7   :  { %1641 = vmatmul.msk.bf16.vlgmr.msra.gmra.mxu2 %vm197_vm1, %v154_v14 }
  0xac   :  { %v213_v26 = vpop.f32.mrf.mxu1 }
  0xb4   :  { %v215_v28 = vpop.f32.mrf.mxu1 }
  0xb7   :  { %1642 = vmatmul.msk.bf16.gmra.mxu2 %vm197_vm1, %v155_v17 }
  0xbc   :  { %v218_v39 = vpop.f32.mrf.mxu1 }
  0xc4   :  { %v220_v43 = vpop.f32.mrf.mxu1 }
 0x12a   :  { %v262_v27 = vpop.f32.mrf.mxu2 }
 0x12b   :  { %v263_v29 = vadd.f32 %v262_v27, %v213_v26 }
 0x12d   :  { %v274_v33 = vadd.f32 %v2005_v30, %v263_v29  ;;  %v1970_v29 = vld [vmem:[#allocation8 + $0x138] sm:$0xff] }
 0x12f   :  { %v278_v37 = vmax.f32 %v274_v33, 0.0 }
 0x132   :  { %v264_v31 = vpop.f32.mrf.mxu2 }
 0x133   :  { %v265_v34 = vadd.f32 %v264_v31, %v215_v28 }
 0x135   :  { %v275_v36 = vadd.f32 %v2005_v30, %v265_v34  ;;  %v1969_v34 = vld [vmem:[#allocation8 + $0x130] sm:$0xff] }
 0x137   :  { %v279_v38 = vmax.f32 %v275_v36, 0.0 }
 0x139   :  { %v282_v40 = vpack.c.bf16 %v279_v38, %v278_v37 }
 0x13a   :  { %v267_v41 = vpop.f32.mrf.mxu2 }
 0x13b   :  { %1661 = vmatmul.msk.bf16.vlgmr.msrb.gmra.mxu0 %vm197_vm1, %v282_v40  ;;  %1697 = vmatmul.msk.bf16.vlgmr.msra.gmra.mxu1 %vm197_vm1, %v282_v40  ;;  %v268_v42 = vadd.f32 %v267_v41, %v218_v39 }
 0x13c   :  { %797 = vmatpush.bf16.msrb.mxu0 %v1970_v29 }
 0x13d   :  { %v276_v45 = vadd.f32 %v2005_v30, %v268_v42  ;;  %v1968_v42 = vld [vmem:[#allocation8 + $0x128] sm:$0xff] }
 0x13f   :  { %v280_v48 = vmax.f32 %v276_v45, 0.0 }
 0x140   :  { %798 = vmatpush.bf16.msrb.mxu0 %v1969_v34 }
 0x142   :  { %v269_v44 = vpop.f32.mrf.mxu2 }
 0x143   :  { %v270_v46 = vadd.f32 %v269_v44, %v220_v43  ;;  %v1976_v43 = vld [vmem:[#allocation8 + $0x168] sm:$0xff] }
 0x144   :  { %799 = vmatpush.bf16.msrb.mxu0 %v1968_v42 }
 0x145   :  { %v277_v47 = vadd.f32 %v2005_v30, %v270_v46  ;;  %v1978_v30 = vld [vmem:[#allocation8 + $0x178] sm:$0xff]  ;;  %v977_v46 = vld [vmem:[#allocation7] sm:$0xff] }
 0x147   :  { %v281_v49 = vmax.f32 %v277_v47, 0.0 }
 0x149   :  { %v283_v50 = vpack.c.bf16 %v281_v49, %v280_v48  ;;  %v1967_v48 = vld [vmem:[#allocation8 + $0x120] sm:$0xff] }
 0x14a   :  { %v1975_v49 = vld [vmem:[#allocation8 + $0x160] sm:$0xff]  ;;  %800 = vmatpush.bf16.msrb.mxu0 %v1967_v48 }
 0x14b   :  { %290 = vmatpush.bf16.msrb.mxu2 %v283_v50  ;;  %1993 = vmatpush.bf16.msra.mxu3 %v283_v50 }
 0x14c   :  { %1662 = vmatmul.msk.bf16.gmra.mxu0 %vm197_vm1, %v283_v50  ;;  %1698 = vmatmul.msk.bf16.gmra.mxu1 %vm197_vm1, %v283_v50 }
 0x14f   :  { %291 = vmatpush.bf16.msrb.mxu2 %v282_v40  ;;  %1994 = vmatpush.bf16.msra.mxu3 %v282_v40 }
 0x152   :  { %1643 = vmatmul.msk.bf16.vlgmr.msrb.gmra.mxu2 %vm128_vm0, %v2263_v4  ;;  %1644 = vmatmul.msk.bf16.vlgmr.msra.gmra.mxu3 %vm128_vm0, %v2265_v5  ;;  %v1955_v4 = vld [vmem:[#allocation8 + $0x40] sm:$0xff] }
 0x153   :  { %406 = vmatpush.bf16.msrb.mxu3 %v1938_v53  ;;  %516 = vmatpush.bf16.msra.mxu2 %v1946_v54 }
 0x154   :  { %700 = vmatpush.bf16.msrb.mxu1 %v1955_v4 }
 0x157   :  { %407 = vmatpush.bf16.msrb.mxu3 %v1937_v55  ;;  %517 = vmatpush.bf16.msra.mxu2 %v1945_v56 }
 0x158   :  { %913 = vmatpush.bf16.msra.mxu1 %v1978_v30 }
 0x15b   :  { %408 = vmatpush.bf16.msrb.mxu3 %v1936_v57  ;;  %518 = vmatpush.bf16.msra.mxu2 %v1944_v58 }
 0x15c   :  { %1733 = vmatmul.msk.bf16.vlgmr.msra.gmra.mxu0 %vm128_vm0, %v2289_v51 }
 0x15f   :  { %409 = vmatpush.bf16.msrb.mxu3 %v1935_v60  ;;  %519 = vmatpush.bf16.msra.mxu2 %v1943_v61 }
 0x163   :  { %648 = vmatpush.bf16.msra.mxu3 %v1962_v3 }
 0x167   :  { %649 = vmatpush.bf16.msra.mxu3 %v1961_v6 }
 0x16b   :  { %650 = vmatpush.bf16.msra.mxu3 %v1960_v8 }
 0x16c   :  { %1734 = vmatmul.msk.bf16.gmra.mxu0 %vm128_vm0, %v2293_v52 }
 0x16f   :  { %651 = vmatpush.bf16.msra.mxu3 %v1959_v10 }
 0x1b8   :  { %v362_v59 = vpop.f32.mrf.mxu0  ;;  %v478_v21 = vpop.f32.mrf.mxu1 }
 0x1c0   :  { %v2297_v62 = vpop.f32.mrf.mxu0  ;;  %v480_v22 = vpop.f32.mrf.mxu1 }
 0x1c9   :  { %v2299_v2 = vpop.f32.mrf.mxu0  ;;  %v483_v36 = vpop.f32.mrf.mxu1 }
 0x1d1   :  { %v2301_v5 = vpop.f32.mrf.mxu0 }
 0x1d5   :  { %v293_v7 = vpop.f32.mrf.mxu2  ;;  %v298_v13 = vpop.f32.mrf.mxu3 }
 0x1d9   :  { %v584_v9 = vpop.f32.mrf.mxu0 }
 0x1dd   :  { %v295_v11 = vpop.f32.mrf.mxu2  ;;  %v300_v17 = vpop.f32.mrf.mxu3 }
 0x1de   :  { %v303_v12 = vpack.c.bf16 %v295_v11, %v293_v7  ;;  %v304_v18 = vpack.c.bf16 %v300_v17, %v298_v13 }
 0x1e0   :  { %1679 = vmatmul.msk.bf16.vlgmr.msrb.gmra.mxu3 %vm197_vm1, %v303_v12  ;;  %1715 = vmatmul.msk.bf16.vlgmr.msra.gmra.mxu2 %vm197_vm1, %v303_v12 }
 0x1e1   :  { %v586_v14 = vpop.f32.mrf.mxu0 }
 0x1e2   :  { %v594_v15 = vpack.c.bf16 %v586_v14, %v584_v9 }
 0x1e4   :  { %1769 = vmatmul.msk.bf16.vlgmr.msrb.gmra.mxu1 %vm197_vm1, %v594_v15  ;;  %v979_v15 = vld [vmem:[#allocation7 + $0x10] sm:$0xff] }
 0x1e9   :  { %v589_v16 = vpop.f32.mrf.mxu0 }
 0x1f0   :  { %1680 = vmatmul.msk.bf16.gmra.mxu3 %vm197_vm1, %v304_v18  ;;  %1716 = vmatmul.msk.bf16.gmra.mxu2 %vm197_vm1, %v304_v18 }
 0x1f1   :  { %v591_v19 = vpop.f32.mrf.mxu0 }
 0x1f2   :  { %v595_v20 = vpack.c.bf16 %v591_v19, %v589_v16 }
 0x1f4   :  { %1770 = vmatmul.msk.bf16.gmra.mxu1 %vm197_vm1, %v595_v20 }
 0x200   :  { %1751 = vmatmul.msk.bf16.vlgmr.msra.gmra.mxu3 %vm197_vm1, %v2278_v35  ;;  %v1977_v35 = vld [vmem:[#allocation8 + $0x170] sm:$0xff] }
 0x201   :  { %914 = vmatpush.bf16.msra.mxu1 %v1977_v35 }
 0x205   :  { %915 = vmatpush.bf16.msra.mxu1 %v1976_v43 }
 0x209   :  { %916 = vmatpush.bf16.msra.mxu1 %v1975_v49 }
 0x210   :  { %1752 = vmatmul.msk.bf16.gmra.mxu3 %vm197_vm1, %v2275_v32 }
 0x263   :  { %v411_v25 = vpop.f32.mrf.mxu3  ;;  %v521_v26 = vpop.f32.mrf.mxu2 }
 0x264   :  { %v412_v27 = vadd.f32 %v411_v25, %v362_v59  ;;  %v522_v28 = vadd.f32 %v521_v26, %v478_v21  ;;  %v485_v59 = vpop.f32.mrf.mxu1  ;;  %v980_v25 = vld [vmem:[#allocation7 + $0x18] sm:$0xff] }
 0x266   :  { %v423_v31 = vadd.f32 %v2313_v23, %v412_v27  ;;  %v533_v33 = vadd.f32 %v2315_v24, %v522_v28 }
 0x268   :  { %1544 = vst.msk [vmem:[#allocation11 + $0x60] sm:$0xff] %vm197_vm1, %v423_v31  ;;  %v981_v32 = vmul.f32 0.5, %v533_v33 }
 0x269   :  { %1554 = vst.msk [vmem:[#allocation11 + $0xa0] sm:$0xff] %vm197_vm1, %v533_v33 }
 0x26a   :  { %v985_v37 = vmul.f32 1.442695, %v981_v32 }
 0x26b   :  { %v413_v38 = vpop.f32.mrf.mxu3  ;;  %v523_v39 = vpop.f32.mrf.mxu2 }
 0x26c   :  { %2013 = vpow2.f32 %v985_v37  ;;  %v414_v40 = vadd.f32 %v413_v38, %v2297_v62  ;;  %v524_v41 = vadd.f32 %v523_v39, %v480_v22  ;;  %v702_v9 = vpop.f32.mrf.mxu1 }
 0x26e   :  { %v424_v44 = vadd.f32 %v2313_v23, %v414_v40  ;;  %v534_v45 = vadd.f32 %v2315_v24, %v524_v41 }
 0x270   :  { %1545 = vst.msk [vmem:[#allocation11 + $0x68] sm:$0xff] %vm197_vm1, %v424_v44  ;;  %v982_v47 = vmul.f32 0.5, %v534_v45 }
 0x271   :  { %1555 = vst.msk [vmem:[#allocation11 + $0xa8] sm:$0xff] %vm197_vm1, %v534_v45 }
 0x272   :  { %v2014_v50 = vpop.eup %2013  ;;  %v987_v53 = vmul.f32 1.442695, %v982_v47 }
 0x273   :  { %v993_v54 = vmul.f32 %v2014_v50, %v977_v46  ;;  %v416_v55 = vpop.f32.mrf.mxu3  ;;  %v526_v56 = vpop.f32.mrf.mxu2  ;;  %v1974_v50 = vld [vmem:[#allocation8 + $0x158] sm:$0xff] }
 0x274   :  { %2015 = vpow2.f32 %v987_v53  ;;  %v417_v57 = vadd.f32 %v416_v55, %v2299_v2  ;;  %v527_v58 = vadd.f32 %v526_v56, %v483_v36  ;;  %v704_v21 = vpop.f32.mrf.mxu1  ;;  %v1973_v53 = vld [vmem:[#allocation8 + $0x150] sm:$0xff]  ;;  %v1971_v56 = vld [vmem:[#allocation8 + $0x140] sm:$0xff] }
 0x275   :  { %v2327_v60 = vadd.f32 %v993_v54, %v423_v31  ;;  %v1972_v54 = vld [vmem:[#allocation8 + $0x148] sm:$0xff] }
 0x276   :  { %v425_v61 = vadd.f32 %v2313_v23, %v417_v57  ;;  %v535_v62 = vadd.f32 %v2315_v24, %v527_v58 }
 0x278   :  { %1546 = vst.msk [vmem:[#allocation11 + $0x70] sm:$0xff] %vm197_vm1, %v425_v61  ;;  %v983_v63 = vmul.f32 0.5, %v535_v62 }
 0x279   :  { %1556 = vst.msk [vmem:[#allocation11 + $0xb0] sm:$0xff] %vm197_vm1, %v535_v62 }
 0x27a   :  { %v2016_v1 = vpop.eup %2015  ;;  %v989_v3 = vmul.f32 1.442695, %v983_v63 }
 0x27b   :  { %v418_v4 = vpop.f32.mrf.mxu3  ;;  %v528_v6 = vpop.f32.mrf.mxu2  ;;  %v994_v7 = vmul.f32 %v2016_v1, %v978_v0 }
 0x27c   :  { %2017 = vpow2.f32 %v989_v3  ;;  %v419_v2 = vadd.f32 %v418_v4, %v2301_v5  ;;  %v529_v8 = vadd.f32 %v528_v6, %v485_v59  ;;  %v707_v37 = vpop.f32.mrf.mxu1  ;;  %v1965_v4 = vld [vmem:[#allocation8 + $0x110] sm:$0xff] }
 0x27d   :  { %v2334_v10 = vadd.f32 %v994_v7, %v424_v44 }
 0x27e   :  { %v426_v11 = vadd.f32 %v2313_v23, %v419_v2  ;;  %v536_v12 = vadd.f32 %v2315_v24, %v529_v8  ;;  %v2008_v24 = vld [vmem:[#allocation10 + $0x1] ss:$0 sm:$0xff] }
 0x27f   :  { %v1215_v13 = vmul.f32 %v2334_v10, %v2334_v10 }
 0x280   :  { %1547 = vst.msk [vmem:[#allocation11 + $0x78] sm:$0xff] %vm197_vm1, %v426_v11  ;;  %v984_v14 = vmul.f32 0.5, %v536_v12 }
 0x281   :  { %1557 = vst.msk [vmem:[#allocation11 + $0xb8] sm:$0xff] %vm197_vm1, %v536_v12  ;;  %v1221_v16 = vsel %vm197_vm1, %v1215_v13, 0.0 }
 0x282   :  { %v2018_v5 = vpop.eup %2017  ;;  %v991_v17 = vmul.f32 1.442695, %v984_v14  ;;  %1222 = vadd.xlane.f32.xlu2 %v1221_v16  ;;  %v1963_v16 = vld [vmem:[#allocation8 + $0x100] sm:$0xff] }
 0x283   :  { %v653_v18 = vpop.f32.mrf.mxu3  ;;  %v995_v19 = vmul.f32 %v2018_v5, %v979_v15 }
 0x284   :  { %2019 = vpow2.f32 %v991_v17  ;;  %v703_v23 = vadd.f32 %v702_v9, %v653_v18  ;;  %v709_v42 = vpop.f32.mrf.mxu1  ;;  %v1964_v9 = vld [vmem:[#allocation8 + $0x108] sm:$0xff] }
 0x285   :  { %v2343_v20 = vadd.f32 %v995_v19, %v425_v61 }
 0x286   :  { %v714_v30 = vadd.f32 %v2008_v24, %v703_v23 }
 0x287   :  { %v1216_v22 = vmul.f32 %v2343_v20, %v2343_v20 }
 0x288   :  { %v718_v35 = vmax.f32 %v714_v30, 0.0  ;;  %v1980_v30 = vld [vmem:[#allocation8 + $0x188] sm:$0xff] }
 0x289   :  { %v1224_v26 = vsel %vm197_vm1, %v1216_v22, 0.0 }
 0x28a   :  { %v2020_v27 = vpop.eup %2019  ;;  %1225 = vadd.xlane.f32.xlu1 %v1224_v26 }
 0x28b   :  { %v655_v28 = vpop.f32.mrf.mxu3  ;;  %v996_v29 = vmul.f32 %v2020_v27, %v980_v25  ;;  %v1982_v27 = vld [vmem:[#allocation8 + $0x198] sm:$0xff] }
 0x28c   :  { %v705_v31 = vadd.f32 %v704_v21, %v655_v28  ;;  %v1981_v28 = vld [vmem:[#allocation8 + $0x190] sm:$0xff] }
 0x28d   :  { %v2348_v33 = vadd.f32 %v996_v29, %v426_v11 }
 0x28e   :  { %v715_v32 = vadd.f32 %v2008_v24, %v705_v31  ;;  %v1979_v31 = vld [vmem:[#allocation8 + $0x180] sm:$0xff] }
 0x28f   :  { %v1217_v34 = vmul.f32 %v2348_v33, %v2348_v33 }
 0x290   :  { %v719_v36 = vmax.f32 %v715_v32, 0.0 }
 0x291   :  { %v1227_v38 = vsel %vm197_vm1, %v1217_v34, 0.0 }
 0x292   :  { %v722_v39 = vpack.c.bf16 %v719_v36, %v718_v35  ;;  %1228 = vadd.xlane.f32.xlu0 %v1227_v38  ;;  %v1026_v38 = vpack.c.bf16 %v2334_v10, %v2327_v60 }
 0x293   :  { %v658_v40 = vpop.f32.mrf.mxu3 }
 0x294   :  { %1789 = vmatmul.msk.bf16.vlgmr.msrb.gmra.mxu0 %vm197_vm1, %v722_v39  ;;  %1825 = vmatmul.msk.bf16.vlgmr.msra.gmra.mxu1 %vm197_vm1, %v722_v39  ;;  %v708_v41 = vadd.f32 %v707_v37, %v658_v40  ;;  %v1986_v40 = vld [vmem:[#allocation8 + $0x1b8] sm:$0xff] }
 0x295   :  { %1082 = vmatpush.bf16.msra.mxu0 %v1986_v40 }
 0x296   :  { %v716_v44 = vadd.f32 %v2008_v24, %v708_v41  ;;  %v1985_v41 = vld [vmem:[#allocation8 + $0x1b0] sm:$0xff] }
 0x298   :  { %v720_v47 = vmax.f32 %v716_v44, 0.0 }
 0x299   :  { %1083 = vmatpush.bf16.msra.mxu0 %v1985_v41 }
 0x29b   :  { %v660_v43 = vpop.f32.mrf.mxu3 }
 0x29c   :  { %v710_v45 = vadd.f32 %v709_v42, %v660_v43  ;;  %v1984_v42 = vld [vmem:[#allocation8 + $0x1a8] sm:$0xff] }
 0x29d   :  { %1084 = vmatpush.bf16.msra.mxu0 %v1984_v42 }
 0x29e   :  { %v717_v46 = vadd.f32 %v2008_v24, %v710_v45  ;;  %v1983_v45 = vld [vmem:[#allocation8 + $0x1a0] sm:$0xff] }
 0x2a0   :  { %v721_v48 = vmax.f32 %v717_v46, 0.0  ;;  %v2009_v46 = vld [vmem:[#allocation10 + $0x4] ss:$0 sm:$0xff] }
 0x2a1   :  { %1085 = vmatpush.bf16.msra.mxu0 %v1983_v45 }
 0x2a2   :  { %v723_v49 = vpack.c.bf16 %v721_v48, %v720_v47  ;;  %v2010_v47 = vld [vmem:[#allocation10 + $0x5] ss:$0 sm:$0xff] }
 0x2a4   :  { %730 = vmatpush.bf16.msrb.mxu2 %v723_v49  ;;  %1790 = vmatmul.msk.bf16.gmra.mxu0 %vm197_vm1, %v723_v49 }
 0x2a5   :  { %1826 = vmatmul.msk.bf16.gmra.mxu1 %vm197_vm1, %v723_v49 }
 0x2a8   :  { %731 = vmatpush.bf16.msrb.mxu2 %v722_v39  ;;  %v1027_v39 = vpack.c.bf16 %v2348_v33, %v2343_v20 }
 0x2ab   :  { %1771 = vmatmul.msk.bf16.vlgmr.msrb.gmra.mxu2 %vm128_vm0, %v2289_v51 }
 0x2ac   :  { %956 = vmatpush.bf16.msra.mxu2 %v1974_v50 }
 0x2b0   :  { %957 = vmatpush.bf16.msra.mxu2 %v1973_v53 }
 0x2b4   :  { %958 = vmatpush.bf16.msra.mxu2 %v1972_v54 }
 0x2b8   :  { %959 = vmatpush.bf16.msra.mxu2 %v1971_v56 }
 0x2bb   :  { %1772 = vmatmul.msk.bf16.gmra.mxu2 %vm128_vm0, %v2293_v52  ;;  %v1966_v52 = vld [vmem:[#allocation8 + $0x118] sm:$0xff] }
 0x2bc   :  { %846 = vmatpush.bf16.msrb.mxu3 %v1966_v52 }
 0x2c0   :  { %847 = vmatpush.bf16.msrb.mxu3 %v1965_v4 }
 0x2c4   :  { %848 = vmatpush.bf16.msrb.mxu3 %v1964_v9 }
 0x2c8   :  { %849 = vmatpush.bf16.msrb.mxu3 %v1963_v16 }
 0x2cc   :  { %1131 = vmatpush.bf16.msra.mxu3 %v1982_v27 }
 0x2d0   :  { %1132 = vmatpush.bf16.msra.mxu3 %v1981_v28 }
 0x2d4   :  { %1133 = vmatpush.bf16.msra.mxu3 %v1980_v30 }
 0x2d8   :  { %1134 = vmatpush.bf16.msra.mxu3 %v1979_v31 }
 0x2f5   :  { %v1223_v55 = vpop.xlane.xlu2 %1222 }
 0x2f6   :  { %v1231_v57 = vadd.f32 1e-16, %v1223_v55 }
 0x2f8   :  { %vm1250_vm9 = vweird.f32 %v1231_v57 }
 0x2fd   :  { %v1226_v58 = vpop.xlane.xlu1 %1225 }
 0x2fe   :  { %v1232_v59 = vadd.f32 1e-16, %v1226_v58 }
 0x300   :  { %2021 = vrsqrt.f32 %v1232_v59  ;;  %vm1260_vm6 = vweird.f32 %v1232_v59 }
 0x301   :  { %2023 = vrsqrt.f32 %v1231_v57 }
 0x305   :  { %v1229_v61 = vpop.xlane.xlu0 %1228 }
 0x306   :  { %v2022_v62 = vpop.eup %2021  ;;  %v1233_v51 = vadd.f32 1e-16, %v1229_v61 }
 0x307   :  { %v2024_v63 = vpop.eup %2023  ;;  %v1255_v0 = vmul.f32 %v2022_v62, %v1232_v59  ;;  %vm1261_vm3 = vweird.f32 %v2022_v62 }
 0x308   :  { %2025 = vrsqrt.f32 %v1233_v51  ;;  %v1245_v1 = vmul.f32 %v2024_v63, %v1231_v57  ;;  %vm1270_vm4 = vweird.f32 %v1233_v51  ;;  %vm1262_vm7 = vmor %vm1260_vm6, %vm1261_vm3  ;;  %vm1251_vm8 = vweird.f32 %v2024_v63 }
 0x309   :  { %v1256_v3 = vmul.f32 %v2022_v62, %v1255_v0  ;;  %vm1252_vm10 = vmor %vm1250_vm9, %vm1251_vm8 }
 0x30a   :  { %v1246_v7 = vmul.f32 %v2024_v63, %v1245_v1 }
 0x30b   :  { %v1257_v2 = vmul.f32 0.5, %v1256_v3 }
 0x30c   :  { %v1247_v12 = vmul.f32 0.5, %v1246_v7 }
 0x30d   :  { %v1258_v13 = vsub.f32 1.5, %v1257_v2 }
 0x30e   :  { %v2026_v6 = vpop.eup %2025  ;;  %v1248_v5 = vsub.f32 1.5, %v1247_v12  ;;  %v1003_v12 = vld [vmem:[#allocation7 + $0x28] sm:$0xff] }
 0x30f   :  { %v1265_v8 = vmul.f32 %v2026_v6, %v1233_v51  ;;  %vm1271_vm2 = vweird.f32 %v2026_v6  ;;  %v1259_v17 = vmul.f32 %v2022_v62, %v1258_v13 }
 0x310   :  { %vm1272_vm5 = vmor %vm1270_vm4, %vm1271_vm2  ;;  %v1249_v22 = vmul.f32 %v2024_v63, %v1248_v5 }
 0x311   :  { %v1266_v11 = vmul.f32 %v2026_v6, %v1265_v8  ;;  %v1263_v23 = vsel %vm1262_vm7, %v2022_v62, %v1259_v17  ;;  %v802_v43 = vpop.f32.mrf.mxu0  ;;  %v918_v44 = vpop.f32.mrf.mxu1  ;;  %v1002_v8 = vld [vmem:[#allocation7 + $0x20] sm:$0xff] }
 0x312   :  { %v2367_v24 = vmul.f32 %v1263_v23, %v2343_v20  ;;  %v1253_v25 = vsel %vm1252_vm10, %v2024_v63, %v1249_v22 }
 0x313   :  { %v1267_v14 = vmul.f32 0.5, %v1266_v11  ;;  %v2372_v26 = vmul.f32 %v1253_v25, %v2334_v10 }
 0x315   :  { %v1268_v15 = vsub.f32 1.5, %v1267_v14 }
 0x317   :  { %v1269_v18 = vmul.f32 %v2026_v6, %v1268_v15 }
 0x319   :  { %v1273_v19 = vsel %vm1272_vm5, %v2026_v6, %v1269_v18  ;;  %v804_v53 = vpop.f32.mrf.mxu0  ;;  %v920_v20 = vpop.f32.mrf.mxu1 }
 0x31a   :  { %v2362_v21 = vmul.f32 %v1273_v19, %v2348_v33 }
 0x31c   :  { %1899 = vmatpush.xpose.msk.msrb.mxu2 %vm197_vm1, %v2362_v21 }
 0x320   :  { %1900 = vmatpush.xpose.msk.msrb.mxu2 %vm197_vm1, %v2367_v24 }
 0x321   :  { %v807_v63 = vpop.f32.mrf.mxu0 }
 0x322   :  { %v923_v0 = vpop.f32.mrf.mxu1 }
 0x324   :  { %1901 = vmatpush.xpose.msk.msrb.mxu2 %vm197_vm1, %v2372_v26 }
 0x329   :  { %v809_v16 = vpop.f32.mrf.mxu0 }
 0x32a   :  { %v925_v5 = vpop.f32.mrf.mxu1 }
 0x32e   :  { %v733_v29 = vpop.f32.mrf.mxu2 }
 0x336   :  { %v735_v32 = vpop.f32.mrf.mxu2 }
 0x337   :  { %v743_v34 = vpack.c.bf16 %v735_v32, %v733_v29 }
 0x339   :  { %1807 = vmatmul.msk.bf16.vlgmr.msrb.gmra.mxu3 %vm197_vm1, %v743_v34  ;;  %1843 = vmatmul.msk.bf16.vlgmr.msra.gmra.mxu2 %vm197_vm1, %v743_v34 }
 0x33e   :  { %v738_v35 = vpop.f32.mrf.mxu2 }
 0x346   :  { %v740_v36 = vpop.f32.mrf.mxu2 }
 0x347   :  { %v744_v37 = vpack.c.bf16 %v740_v36, %v738_v35  ;;  %v1004_v36 = vld [vmem:[#allocation7 + $0x30] sm:$0xff] }
 0x349   :  { %1808 = vmatmul.msk.bf16.gmra.mxu3 %vm197_vm1, %v744_v37  ;;  %1844 = vmatmul.msk.bf16.gmra.mxu2 %vm197_vm1, %v744_v37  ;;  %v1005_v37 = vld [vmem:[#allocation7 + $0x38] sm:$0xff] }
 0x359   :  { %1879 = vmatmul.msk.bf16.vlgmr.msra.gmra.mxu3 %vm197_vm1, %v1026_v38 }
 0x369   :  { %1880 = vmatmul.msk.bf16.gmra.mxu3 %vm197_vm1, %v1027_v39 }
 0x3bc   :  { %v851_v10 = vpop.f32.mrf.mxu3  ;;  %v961_v48 = vpop.f32.mrf.mxu2 }
 0x3bd   :  { %v852_v49 = vadd.f32 %v851_v10, %v802_v43  ;;  %v962_v50 = vadd.f32 %v961_v48, %v918_v44 }
 0x3bf   :  { %v863_v33 = vadd.f32 %v2009_v46, %v852_v49  ;;  %v973_v54 = vadd.f32 %v2010_v47, %v962_v50  ;;  %v1990_v49 = vld [vmem:[#allocation8 + $0x1d8] sm:$0xff]  ;;  %v1989_v50 = vld [vmem:[#allocation8 + $0x1d0] sm:$0xff] }
 0x3c0   :  { %1199 = vmatpush.bf16.msrb.mxu1 %v1990_v49 }
 0x3c1   :  { %1549 = vst.msk [vmem:[#allocation11 + $0x80] sm:$0xff] %vm197_vm1, %v863_v33  ;;  %v1006_v55 = vmul.f32 0.5, %v973_v54 }
 0x3c2   :  { %1559 = vst.msk [vmem:[#allocation11 + $0xc0] sm:$0xff] %vm197_vm1, %v973_v54 }
 0x3c3   :  { %v1010_v58 = vmul.f32 1.442695, %v1006_v55 }
 0x3c4   :  { %v853_v56 = vpop.f32.mrf.mxu3  ;;  %v963_v57 = vpop.f32.mrf.mxu2  ;;  %1200 = vmatpush.bf16.msrb.mxu1 %v1989_v50 }
 0x3c5   :  { %v854_v59 = vadd.f32 %v853_v56, %v804_v53  ;;  %v964_v61 = vadd.f32 %v963_v57, %v920_v20  ;;  %2027 = vpow2.f32 %v1010_v58  ;;  %v1988_v53 = vld [vmem:[#allocation8 + $0x1c8] sm:$0xff]  ;;  %v1987_v20 = vld [vmem:[#allocation8 + $0x1c0] sm:$0xff] }
 0x3c6   :  { %v2011_v57 = vld [vmem:[#allocation10 + $0x6] ss:$0 sm:$0xff] }
 0x3c7   :  { %v864_v62 = vadd.f32 %v2009_v46, %v854_v59  ;;  %v974_v51 = vadd.f32 %v2010_v47, %v964_v61 }
 0x3c8   :  { %1201 = vmatpush.bf16.msrb.mxu1 %v1988_v53 }
 0x3c9   :  { %1550 = vst.msk [vmem:[#allocation11 + $0x88] sm:$0xff] %vm197_vm1, %v864_v62  ;;  %v1007_v52 = vmul.f32 0.5, %v974_v51 }
 0x3ca   :  { %1560 = vst.msk [vmem:[#allocation11 + $0xc8] sm:$0xff] %vm197_vm1, %v974_v51 }
 0x3cb   :  { %v1012_v1 = vmul.f32 1.442695, %v1007_v52  ;;  %v2028_v2 = vpop.eup %2027 }
 0x3cc   :  { %v856_v3 = vpop.f32.mrf.mxu3  ;;  %v966_v4 = vpop.f32.mrf.mxu2  ;;  %v1018_v14 = vmul.f32 %v2028_v2, %v1002_v8  ;;  %1202 = vmatpush.bf16.msrb.mxu1 %v1987_v20 }
 0x3cd   :  { %2029 = vpow2.f32 %v1012_v1  ;;  %v857_v6 = vadd.f32 %v856_v3, %v807_v63  ;;  %v967_v7 = vadd.f32 %v966_v4, %v923_v0 }
 0x3ce   :  { %v2392_v27 = vadd.f32 %v1018_v14, %v863_v33 }
 0x3cf   :  { %v865_v9 = vadd.f32 %v2009_v46, %v857_v6  ;;  %v975_v11 = vadd.f32 %v2010_v47, %v967_v7 }
 0x3d0   :  { %v1323_v10 = vmul.f32 %v2392_v27, %v2392_v27 }
 0x3d1   :  { %1551 = vst.msk [vmem:[#allocation11 + $0x90] sm:$0xff] %vm197_vm1, %v865_v9  ;;  %v1008_v13 = vmul.f32 0.5, %v975_v11 }
 0x3d2   :  { %1561 = vst.msk [vmem:[#allocation11 + $0xd0] sm:$0xff] %vm197_vm1, %v975_v11  ;;  %v1327_v48 = vsel %vm197_vm1, %v1323_v10, 0.0 }
 0x3d3   :  { %v2030_v15 = vpop.eup %2029  ;;  %v1014_v22 = vmul.f32 1.442695, %v1008_v13 }
 0x3d4   :  { %v1019_v17 = vmul.f32 %v2030_v15, %v1003_v12  ;;  %v858_v18 = vpop.f32.mrf.mxu3  ;;  %v968_v19 = vpop.f32.mrf.mxu2 }
 0x3d5   :  { %v859_v23 = vadd.f32 %v858_v18, %v809_v16  ;;  %v969_v25 = vadd.f32 %v968_v19, %v925_v5  ;;  %2031 = vpow2.f32 %v1014_v22 }
 0x3d6   :  { %v2394_v28 = vadd.f32 %v1019_v17, %v864_v62 }
 0x3d7   :  { %v866_v29 = vadd.f32 %v2009_v46, %v859_v23  ;;  %v976_v30 = vadd.f32 %v2010_v47, %v969_v25  ;;  %v1214_v46 = vmul.f32 %v2327_v60, %v2327_v60 }
 0x3d8   :  { %v1037_v31 = vpack.c.bf16 %v2394_v28, %v2392_v27  ;;  %v1324_v10 = vmul.f32 %v2394_v28, %v2394_v28 }
 0x3d9   :  { %1552 = vst.msk [vmem:[#allocation11 + $0x98] sm:$0xff] %vm197_vm1, %v866_v29  ;;  %v1009_v32 = vmul.f32 0.5, %v976_v30  ;;  %v1218_v47 = vsel %vm197_vm1, %v1214_v46, 0.0 }
 0x3da   :  { %1562 = vst.msk [vmem:[#allocation11 + $0xd8] sm:$0xff] %vm197_vm1, %v976_v30  ;;  %1861 = vmatmul.msk.bf16.vlgmr.msra.gmra.mxu0 %vm197_vm1, %v1037_v31  ;;  %v1330_v49 = vsel %vm197_vm1, %v1324_v10, 0.0 }
 0x3db   :  { %v1016_v34 = vmul.f32 1.442695, %v1009_v32  ;;  %v2032_v35 = vpop.eup %2031 }
 0x3dc   :  { %v1020_v38 = vmul.f32 %v2032_v35, %v1004_v36  ;;  %v1136_v33 = vpop.f32.mrf.mxu3  ;;  %v2012_v35 = vld [vmem:[#allocation10 + $0x7] ss:$0 sm:$0xff] }
 0x3dd   :  { %2033 = vpow2.f32 %v1016_v34 }
 0x3de   :  { %v2401_v41 = vadd.f32 %v1020_v38, %v865_v9 }
 0x3e3   :  { %v2034_v39 = vpop.eup %2033 }
 0x3e4   :  { %v1021_v40 = vmul.f32 %v2034_v39, %v1005_v37  ;;  %v1138_v55 = vpop.f32.mrf.mxu3 }
 0x3e6   :  { %v1025_v42 = vadd.f32 %v1021_v40, %v866_v29 }
 0x3e8   :  { %v1038_v43 = vpack.c.bf16 %v1025_v42, %v2401_v41  ;;  %v1326_v44 = vmul.f32 %v1025_v42, %v1025_v42 }
 0x3ea   :  { %1862 = vmatmul.msk.bf16.gmra.mxu0 %vm197_vm1, %v1038_v43  ;;  %v1336_v45 = vsel %vm197_vm1, %v1326_v44, 0.0  ;;  %v1325_v43 = vmul.f32 %v2401_v41, %v2401_v41 }
 0x3eb   :  { %1337 = vadd.xlane.f32.xlu2 %v1336_v45 }
 0x3ec   :  { %v1141_v52 = vpop.f32.mrf.mxu3  ;;  %v1333_v46 = vsel %vm197_vm1, %v1325_v43, 0.0 }
 0x3f3   :  { %1219 = vadd.xlane.f32.xlu2 %v1218_v47 }
 0x3f4   :  { %v1143_v13 = vpop.f32.mrf.mxu3 }
 0x3fb   :  { %1328 = vadd.xlane.f32.xlu2 %v1327_v48 }
 0x457   :  { %v1087_v54 = vpop.f32.mrf.mxu0 }
 0x458   :  { %v1137_v56 = vadd.f32 %v1136_v33, %v1087_v54 }
 0x45a   :  { %v1148_v51 = vadd.f32 %v2011_v57, %v1137_v56 }
 0x45e   :  { %v1338_v58 = vpop.xlane.xlu2 %1337 }
 0x45f   :  { %v1342_v59 = vadd.f32 1e-16, %v1338_v58  ;;  %v1089_v61 = vpop.f32.mrf.mxu0 }
 0x460   :  { %v1139_v62 = vadd.f32 %v1138_v55, %v1089_v61 }
 0x461   :  { %2035 = vrsqrt.f32 %v1342_v59  ;;  %vm1379_vm12 = vweird.f32 %v1342_v59 }
 0x462   :  { %v1149_v63 = vadd.f32 %v2011_v57, %v1139_v62 }
 0x464   :  { %v1152_v0 = vpack.c.bf16 %v1149_v63, %v1148_v51 }
 0x466   :  { %v1220_v1 = vpop.xlane.xlu2 %1219  ;;  %1897 = vmatmul.msk.bf16.vlgmr.msrb.gmra.mxu1 %vm197_vm1, %v1152_v0 }
 0x467   :  { %v2036_v3 = vpop.eup %2035  ;;  %v1230_v4 = vadd.f32 1e-16, %v1220_v1  ;;  %v1092_v6 = vpop.f32.mrf.mxu0 }
 0x468   :  { %v1374_v7 = vmul.f32 %v2036_v3, %v1342_v59  ;;  %vm1380_vm11 = vweird.f32 %v2036_v3  ;;  %v1142_v11 = vadd.f32 %v1141_v52, %v1092_v6 }
 0x469   :  { %2037 = vrsqrt.f32 %v1230_v4  ;;  %vm1381_vm13 = vmor %vm1379_vm12, %vm1380_vm11  ;;  %vm1240_vm15 = vweird.f32 %v1230_v4 }
 0x46a   :  { %v1375_v2 = vmul.f32 %v2036_v3, %v1374_v7  ;;  %v1150_v19 = vadd.f32 %v2011_v57, %v1142_v11 }
 0x46c   :  { %v1376_v8 = vmul.f32 0.5, %v1375_v2 }
 0x46e   :  { %v1377_v9 = vsub.f32 1.5, %v1376_v8  ;;  %v1329_v56 = vpop.xlane.xlu2 %1328 }
 0x46f   :  { %v2038_v12 = vpop.eup %2037  ;;  %v1094_v14 = vpop.f32.mrf.mxu0  ;;  %v2465_v59 = vadd.f32 1e-16, %v1329_v56 }
 0x470   :  { %v1378_v15 = vmul.f32 %v2036_v3, %v1377_v9  ;;  %v1235_v16 = vmul.f32 %v2038_v12, %v1230_v4  ;;  %v1144_v5 = vadd.f32 %v1143_v13, %v1094_v14  ;;  %vm1241_vm14 = vweird.f32 %v2038_v12 }
 0x471   :  { %vm1242_vm2 = vmor %vm1240_vm15, %vm1241_vm14 }
 0x472   :  { %v1382_v17 = vsel %vm1381_vm13, %v2036_v3, %v1378_v15  ;;  %v1236_v18 = vmul.f32 %v2038_v12, %v1235_v16  ;;  %v1151_v22 = vadd.f32 %v2011_v57, %v1144_v5 }
 0x473   :  { %v2413_v23 = vmul.f32 %v1382_v17, %v1025_v42 }
 0x474   :  { %v1237_v25 = vmul.f32 0.5, %v1236_v18  ;;  %v1153_v29 = vpack.c.bf16 %v1151_v22, %v1150_v19 }
 0x475   :  { %1907 = vmatpush.xpose.msk.msrb.mxu0 %vm197_vm1, %v2413_v23 }
 0x476   :  { %v1238_v30 = vsub.f32 1.5, %v1237_v25  ;;  %1898 = vmatmul.msk.bf16.gmra.mxu1 %vm197_vm1, %v1153_v29 }
 0x478   :  { %v1239_v31 = vmul.f32 %v2038_v12, %v1238_v30 }
 0x47a   :  { %v1243_v32 = vsel %vm1242_vm2, %v2038_v12, %v1239_v31 }
 0x47b   :  { %v1274_v34 = vmul.f32 %v1243_v32, %v2327_v60 }
 0x47d   :  { %1902 = vmatpush.xpose.msk.msrb.mxu2 %vm197_vm1, %v1274_v34 }
 0x480   :  { %1903 = vmatmul.msk.f32.vlgmr.msrb.gmra.mxu2 %vm197_vm1, %v1274_v34 }
 0x488   :  { %1904 = vmatmul.msk.f32.gmra.mxu2 %vm197_vm1, %v2372_v26 }
 0x490   :  { %1905 = vmatmul.msk.f32.gmra.mxu2 %vm197_vm1, %v2367_v24 }
 0x498   :  { %1906 = vmatmul.msk.f32.gmra.mxu2 %vm197_vm1, %v2362_v21 }
 0x4e3   :  { %v1204_v36 = vpop.f32.mrf.mxu1 }
 0x4e4   :  { %v2427_v37 = vadd.f32 %v2012_v35, %v1204_v36 }
 0x4e6   :  { %1564 = vst.msk [vmem:[#allocation11 + $0xe0] sm:$0xff] %vm197_vm1, %v2427_v37  ;;  %v1433_v20 = vmul.f32 %v2427_v37, %v2427_v37 }
 0x4e8   :  { %v1437_v33 = vsel %vm197_vm1, %v1433_v20, 0.0 }
 0x4eb   :  { %v1206_v60 = vpop.f32.mrf.mxu1 }
 0x4ec   :  { %v2431_v38 = vadd.f32 %v2012_v35, %v1206_v60 }
 0x4ee   :  { %1565 = vst.msk [vmem:[#allocation11 + $0xe8] sm:$0xff] %vm197_vm1, %v2431_v38  ;;  %v1434_v48 = vmul.f32 %v2431_v38, %v2431_v38 }
 0x4f0   :  { %v1440_v50 = vsel %vm197_vm1, %v1434_v48, 0.0 }
 0x4f3   :  { %v1209_v26 = vpop.f32.mrf.mxu1 }
 0x4f4   :  { %v2435_v39 = vadd.f32 %v2012_v35, %v1209_v26 }
 0x4f6   :  { %1566 = vst.msk [vmem:[#allocation11 + $0xf0] sm:$0xff] %vm197_vm1, %v2435_v39  ;;  %v1435_v21 = vmul.f32 %v2435_v39, %v2435_v39 }
 0x4f8   :  { %v1443_v24 = vsel %vm197_vm1, %v1435_v21, 0.0 }
 0x4f9   :  { %1444 = vadd.xlane.f32.xlu1 %v1443_v24 }
 0x4fb   :  { %v1211_v40 = vpop.f32.mrf.mxu1 }
 0x4fc   :  { %v2442_v42 = vadd.f32 %v2012_v35, %v1211_v40 }
 0x4fe   :  { %1567 = vst.msk [vmem:[#allocation11 + $0xf8] sm:$0xff] %vm197_vm1, %v2442_v42  ;;  %v1436_v44 = vmul.f32 %v2442_v42, %v2442_v42 }
 0x500   :  { %v1446_v45 = vsel %vm197_vm1, %v1436_v44, 0.0 }
 0x501   :  { %1447 = vadd.xlane.f32.xlu0 %v1446_v45  ;;  %1334 = vadd.xlane.f32.xlu1 %v1333_v46 }
 0x503   :  { %v1307_v47 = vpop.f32.mrf.mxu2 }
 0x504   :  { %1319 = vst.msk [vmem:[#allocation11] sm:$0xff] %vm128_vm0, %v1307_v47 }
 0x509   :  { %1331 = vadd.xlane.f32.xlu1 %v1330_v49  ;;  %1441 = vadd.xlane.f32.xlu0 %v1440_v50 }
 0x50b   :  { %v1310_v53 = vpop.f32.mrf.mxu2 }
 0x50c   :  { %1320 = vst.msk [vmem:[#allocation11 + $0x8] sm:$0xff] %vm128_vm0, %v1310_v53 }
 0x511   :  { %1438 = vadd.xlane.f32.xlu0 %v1437_v33 }
 0x513   :  { %v1313_v54 = vpop.f32.mrf.mxu2 }
 0x514   :  { %1321 = vst.msk [vmem:[#allocation11 + $0x10] sm:$0xff] %vm128_vm0, %v1313_v54 }
 0x51b   :  { %v1316_v55 = vpop.f32.mrf.mxu2 }
 0x51c   :  { %1322 = vst.msk [vmem:[#allocation11 + $0x18] sm:$0xff] %vm128_vm0, %v1316_v55 }
 0x56c   :  { %v1445_v57 = vpop.xlane.xlu1 %1444 }
 0x56d   :  { %v1451_v58 = vadd.f32 1e-16, %v1445_v57 }
 0x56f   :  { %2039 = vrsqrt.f32 %v1451_v58  ;;  %vm1479_vm9 = vweird.f32 %v1451_v58 }
 0x570   :  { %2041 = vrsqrt.f32 %v2465_v59 }
 0x574   :  { %v1448_v61 = vpop.xlane.xlu0 %1447  ;;  %v1335_v62 = vpop.xlane.xlu1 %1334 }
 0x575   :  { %v2468_v51 = vpop.eup %2039  ;;  %v1452_v63 = vadd.f32 1e-16, %v1448_v61  ;;  %v1341_v0 = vadd.f32 1e-16, %v1335_v62 }
 0x576   :  { %v1474_v52 = vmul.f32 %v2468_v51, %v1451_v58  ;;  %v2471_v1 = vpop.eup %2041  ;;  %vm1480_vm4 = vweird.f32 %v2468_v51 }
 0x577   :  { %2043 = vrsqrt.f32 %v1452_v63  ;;  %v1344_v4 = vmul.f32 %v2471_v1, %v2465_v59  ;;  %vm1489_vm6 = vweird.f32 %v1452_v63  ;;  %vm1369_vm8 = vweird.f32 %v1341_v0  ;;  %vm2485_vm11 = vmor %vm1479_vm9, %vm1480_vm4 }
 0x578   :  { %2045 = vrsqrt.f32 %v1341_v0  ;;  %v1475_v3 = vmul.f32 %v2468_v51, %v1474_v52  ;;  %vm1350_vm13 = vweird.f32 %v2471_v1  ;;  %vm1349_vm4 = vweird.f32 %v2465_v59 }
 0x579   :  { %v1345_v15 = vmul.f32 %v2471_v1, %v1344_v4 }
 0x57a   :  { %v1476_v12 = vmul.f32 0.5, %v1475_v3 }
 0x57b   :  { %v1346_v22 = vmul.f32 0.5, %v1345_v15 }
 0x57c   :  { %v1332_v6 = vpop.xlane.xlu1 %1331  ;;  %v1442_v7 = vpop.xlane.xlu0 %1441  ;;  %v1477_v17 = vsub.f32 1.5, %v1476_v12 }
 0x57d   :  { %v2044_v2 = vpop.eup %2043  ;;  %v1340_v8 = vadd.f32 1e-16, %v1332_v6  ;;  %v2476_v9 = vadd.f32 1e-16, %v1442_v7  ;;  %v1347_v47 = vsub.f32 1.5, %v1346_v22 }
 0x57e   :  { %v2046_v11 = vpop.eup %2045  ;;  %v1484_v13 = vmul.f32 %v2044_v2, %v1452_v63  ;;  %vm1490_vm3 = vweird.f32 %v2044_v2  ;;  %v1478_v35 = vmul.f32 %v2468_v51, %v1477_v17 }
 0x57f   :  { %v1364_v14 = vmul.f32 %v2046_v11, %v1341_v0  ;;  %2047 = vrsqrt.f32 %v1340_v8  ;;  %vm1370_vm5 = vweird.f32 %v2046_v11  ;;  %vm1491_vm7 = vmor %vm1489_vm6, %vm1490_vm3  ;;  %v1348_v54 = vmul.f32 %v2471_v1, %v1347_v47 }
 0x580   :  { %v1485_v16 = vmul.f32 %v2044_v2, %v1484_v13  ;;  %2049 = vrsqrt.f32 %v2476_v9  ;;  %vm1371_vm10 = vmor %vm1369_vm8, %vm1370_vm5  ;;  %v1482_v10 = vsel %vm2485_vm11, %v2468_v51, %v1478_v35  ;;  %vm1359_vm15 = vweird.f32 %v1340_v8 }
 0x581   :  { %v1365_v5 = vmul.f32 %v2046_v11, %v1364_v14  ;;  %v1495_v33 = vmul.f32 %v1482_v10, %v2435_v39  ;;  %vm1469_vm3 = vweird.f32 %v2476_v9  ;;  %vm1351_vm6 = vmor %vm1349_vm4, %vm1350_vm13 }
 0x582   :  { %v1486_v18 = vmul.f32 0.5, %v1485_v16  ;;  %v1352_v62 = vsel %vm1351_vm6, %v2471_v1, %v1348_v54 }
 0x583   :  { %v1366_v19 = vmul.f32 0.5, %v1365_v5  ;;  %v1383_v59 = vmul.f32 %v1352_v62, %v2392_v27 }
 0x584   :  { %v1487_v25 = vsub.f32 1.5, %v1486_v18  ;;  %v1439_v29 = vpop.xlane.xlu0 %1438 }
 0x585   :  { %v2048_v30 = vpop.eup %2047  ;;  %v1367_v31 = vsub.f32 1.5, %v1366_v19  ;;  %v1449_v32 = vadd.f32 1e-16, %v1439_v29 }
 0x586   :  { %v2050_v34 = vpop.eup %2049  ;;  %v1488_v36 = vmul.f32 %v2044_v2, %v1487_v25  ;;  %v1354_v60 = vmul.f32 %v2048_v30, %v1340_v8  ;;  %vm1360_vm12 = vweird.f32 %v2048_v30 }
 0x587   :  { %v1368_v26 = vmul.f32 %v2046_v11, %v1367_v31  ;;  %v1464_v21 = vmul.f32 %v2050_v34, %v2476_v9  ;;  %2051 = vrsqrt.f32 %v1449_v32  ;;  %vm1470_vm14 = vweird.f32 %v2050_v34  ;;  %vm1361_vm2 = vmor %vm1359_vm15, %vm1360_vm12 }
 0x588   :  { %v1492_v24 = vsel %vm1491_vm7, %v2044_v2, %v1488_v36  ;;  %v1355_v40 = vmul.f32 %v2048_v30, %v1354_v60  ;;  %vm1471_vm5 = vmor %vm1469_vm3, %vm1470_vm14  ;;  %vm1459_vm8 = vweird.f32 %v1449_v32 }
 0x589   :  { %v1496_v44 = vmul.f32 %v1492_v24, %v2442_v42  ;;  %v1372_v45 = vsel %vm1371_vm10, %v2046_v11, %v1368_v26  ;;  %v1465_v46 = vmul.f32 %v2050_v34, %v1464_v21 }
 0x58a   :  { %v1356_v48 = vmul.f32 0.5, %v1355_v40  ;;  %v1385_v49 = vmul.f32 %v1372_v45, %v2401_v41 }
 0x58b   :  { %v1466_v50 = vmul.f32 0.5, %v1465_v46  ;;  %1915 = vmatpush.xpose.msk.msrb.mxu3 %vm197_vm1, %v1496_v44 }
 0x58c   :  { %v1357_v53 = vsub.f32 1.5, %v1356_v48  ;;  %1908 = vmatpush.xpose.msk.msrb.mxu0 %vm197_vm1, %v1385_v49 }
 0x58d   :  { %v2052_v20 = vpop.eup %2051  ;;  %v1467_v42 = vsub.f32 1.5, %v1466_v50 }
 0x58e   :  { %v1358_v55 = vmul.f32 %v2048_v30, %v1357_v53  ;;  %v1454_v56 = vmul.f32 %v2052_v20, %v1449_v32  ;;  %vm1460_vm7 = vweird.f32 %v2052_v20 }
 0x58f   :  { %v1468_v41 = vmul.f32 %v2050_v34, %v1467_v42  ;;  %1916 = vmatpush.xpose.msk.msrb.mxu3 %vm197_vm1, %v1495_v33  ;;  %vm1461_vm9 = vmor %vm1459_vm8, %vm1460_vm7 }
 0x590   :  { %v1362_v57 = vsel %vm1361_vm2, %v2048_v30, %v1358_v55  ;;  %v1455_v58 = vmul.f32 %v2052_v20, %v1454_v56 }
 0x591   :  { %v1472_v39 = vsel %vm1471_vm5, %v2050_v34, %v1468_v41  ;;  %v1384_v61 = vmul.f32 %v1362_v57, %v2394_v28 }
 0x592   :  { %v1456_v51 = vmul.f32 0.5, %v1455_v58  ;;  %v1494_v63 = vmul.f32 %v1472_v39, %v2431_v38 }
 0x593   :  { %1909 = vmatpush.xpose.msk.msrb.mxu0 %vm197_vm1, %v1384_v61 }
 0x594   :  { %v1457_v0 = vsub.f32 1.5, %v1456_v51  ;;  %1917 = vmatpush.xpose.msk.msrb.mxu3 %vm197_vm1, %v1494_v63 }
 0x596   :  { %v1458_v52 = vmul.f32 %v2052_v20, %v1457_v0 }
 0x597   :  { %1910 = vmatpush.xpose.msk.msrb.mxu0 %vm197_vm1, %v1383_v59 }
 0x598   :  { %v1462_v3 = vsel %vm1461_vm9, %v2052_v20, %v1458_v52 }
 0x599   :  { %v1493_v28 = vmul.f32 %v1462_v3, %v2427_v37 }
 0x59a   :  { %1911 = vmatmul.msk.f32.vlgmr.msrb.gmra.mxu0 %vm197_vm1, %v1383_v59 }
 0x59b   :  { %1918 = vmatpush.xpose.msk.msrb.mxu3 %vm197_vm1, %v1493_v28 }
 0x59e   :  { %1919 = vmatmul.msk.f32.vlgmr.msrb.gmra.mxu3 %vm197_vm1, %v1493_v28 }
 0x5a2   :  { %1912 = vmatmul.msk.f32.gmra.mxu0 %vm197_vm1, %v1384_v61 }
 0x5a6   :  { %1920 = vmatmul.msk.f32.gmra.mxu3 %vm197_vm1, %v1494_v63 }
 0x5aa   :  { %1913 = vmatmul.msk.f32.gmra.mxu0 %vm197_vm1, %v1385_v49 }
 0x5ae   :  { %1921 = vmatmul.msk.f32.gmra.mxu3 %vm197_vm1, %v1495_v33 }
 0x5b2   :  { %1914 = vmatmul.msk.f32.gmra.mxu0 %vm197_vm1, %v2413_v23 }
 0x5b6   :  { %1922 = vmatmul.msk.f32.gmra.mxu3 %vm197_vm1, %v1496_v44 }
 0x617   :  { %v1416_v27 = vpop.f32.mrf.mxu0 }
 0x618   :  { %1429 = vst.msk [vmem:[#allocation11 + $0x20] sm:$0xff] %vm128_vm0, %v1416_v27 }
 0x61f   :  { %v1419_v37 = vpop.f32.mrf.mxu0 }
 0x620   :  { %1430 = vst.msk [vmem:[#allocation11 + $0x28] sm:$0xff] %vm128_vm0, %v1419_v37 }
 0x621   :  { %v1526_v38 = vpop.f32.mrf.mxu3 }
 0x622   :  { %1539 = vst.msk [vmem:[#allocation11 + $0x40] sm:$0xff] %vm128_vm0, %v1526_v38 }
 0x627   :  { %v1422_v1 = vpop.f32.mrf.mxu0 }
 0x628   :  { %1431 = vst.msk [vmem:[#allocation11 + $0x30] sm:$0xff] %vm128_vm0, %v1422_v1 }
 0x629   :  { %v1529_v4 = vpop.f32.mrf.mxu3 }
 0x62a   :  { %1540 = vst.msk [vmem:[#allocation11 + $0x48] sm:$0xff] %vm128_vm0, %v1529_v4 }
 0x62f   :  { %v1425_v6 = vpop.f32.mrf.mxu0 }
 0x630   :  { %1432 = vst.msk [vmem:[#allocation11 + $0x38] sm:$0xff] %vm128_vm0, %v1425_v6 }
 0x631   :  { %v1532_v23 = vpop.f32.mrf.mxu3 }
 0x632   :  { %1541 = vst.msk [vmem:[#allocation11 + $0x50] sm:$0xff] %vm128_vm0, %v1532_v23 }
 0x639   :  { %v1535_v7 = vpop.f32.mrf.mxu3 }
 0x63a   :  { %1542 = vst.msk [vmem:[#allocation11 + $0x58] sm:$0xff] %vm128_vm0, %v1535_v7 }
 0x63b   :  { %1580 = dma.vmem_to_hbm [thread:$0]  %s1573_s18, 4096, %s1575_s21, [#allocation4], %s2211_s13, %s2211_s13, %s2212_s14  }
 0x63c   :  { %2203 = dma.done.wait [#allocation4], 4096  }
 0x63d   :  { %2204 = vsyncadd [#allocation4], 4294963200 }
 0x63e   :  { %1585 = vsyncpa [#allocation3], 1 }
 0x63f   :  { %1586 = vsyncpa [#allocation6], 1 }
 0x640   :  { %1587 = vsyncpa [#allocation9], 1 }
 0x641   :  { %1588 = vsyncpa [#allocation4], 1 }

</bundles_post_ra>
